<compile_context>
chip_gen: v6e
topology: v6e:2x2x1
jax: 0.10.0
libtpu: 0.0.40
codegen_flags: <defaults>
</compile_context>

<pallas_src>
import functools
import math

import jax
import jax.numpy as jnp
from jax.experimental import pallas as pl
from jax.experimental.pallas import tpu as pltpu


# ----------------------------- in-kernel helpers -----------------------------

def _erf(x):
    # Abramowitz & Stegun 7.1.26 polynomial (max abs err ~1.5e-7); exp runs on
    # the EUP.  Kept erf-exact to match PyTorch nn.GELU() (approximate='none').
    a1, a2, a3, a4, a5 = 0.254829592, -0.284496736, 1.421413741, -1.453152027, 1.061405429
    p = 0.3275911
    sgn = jnp.where(x >= 0.0, 1.0, -1.0)
    ax = jnp.abs(x)
    t = 1.0 / (1.0 + p * ax)
    poly = ((((a5 * t + a4) * t + a3) * t + a2) * t + a1) * t
    return sgn * (1.0 - poly * jnp.exp(-ax * ax))


def _gelu_exact(x):
    return 0.5 * x * (1.0 + _erf(x * (1.0 / math.sqrt(2.0))))


def _layernorm(x, g, b, eps=1e-5):
    # x: (R, D); g, b: (1, D).  Biased variance, eps=1e-5 (PyTorch LayerNorm).
    mu = jnp.mean(x, axis=-1, keepdims=True)
    var = jnp.mean((x - mu) * (x - mu), axis=-1, keepdims=True)
    return (x - mu) * jax.lax.rsqrt(var + eps) * g + b


# --------------------------------- kernel ------------------------------------

def decoder_stack_kernel(x_ref, m_ref,
                         ln1g_ref, ln1b_ref,
                         wq_ref, wk_ref, wv_ref, wo_ref, bo_ref,
                         ln2g_ref, ln2b_ref,
                         w1_ref, b1_ref, w2_ref, b2_ref,
                         o_ref, xacc_ref, macc_ref,
                         *, scale, heads, dim_head):
    layer = pl.program_id(1)
    n_layers = pl.num_programs(1)

    bt, N, D = xacc_ref.shape
    _, Nm, _ = macc_ref.shape
    dh = dim_head
    inner = heads * dh

    # Carry activations (and the f32 cast of m) in VMEM across the depth axis.
    @pl.when(layer == 0)
    def _():
        xacc_ref[...] = x_ref[...].astype(jnp.float32)
        macc_ref[...] = m_ref[...].astype(jnp.float32)

    x2d = xacc_ref[...].reshape(bt * N, D)      # (R, D)  f32
    m2d = macc_ref[...].reshape(bt * Nm, D)     # (Rm, D) f32

    # ---- Residual2(PreNorm2(Cross_Attention)) ----
    # PreNorm2 applies the SAME LayerNorm parameters to both x and m.
    ln1g = ln1g_ref[0]
    ln1b = ln1b_ref[0]
    nx = _layernorm(x2d, ln1g, ln1b).astype(jnp.bfloat16)
    nm = _layernorm(m2d, ln1g, ln1b).astype(jnp.bfloat16)

    # Fused full-width projections: one MXU matmul each (K = D, N = inner).
    q_full = jnp.dot(nx, wq_ref[0], preferred_element_type=jnp.float32) * scale
    k_full = jnp.dot(nm, wk_ref[0], preferred_element_type=jnp.float32)
    v_full = jnp.dot(nm, wv_ref[0], preferred_element_type=jnp.float32)

    q3 = q_full.reshape(bt, N, inner).astype(jnp.bfloat16)
    k3 = k_full.reshape(bt, Nm, inner).astype(jnp.bfloat16)
    v3 = v_full.reshape(bt, Nm, inner).astype(jnp.bfloat16)

    # Per-head attention (heads picked out via static lane slices only here).
    head_outs = []
    for h in range(heads):
        lo, hi = h * dh, (h + 1) * dh
        qh = q3[:, :, lo:hi]                    # (bt, N, dh)  bf16
        kh = k3[:, :, lo:hi]                    # (bt, Nm, dh) bf16
        vh = v3[:, :, lo:hi]                    # (bt, Nm, dh) bf16

        dots = jnp.einsum('bqd,bkd->bqk', qh, kh,
                          preferred_element_type=jnp.float32)   # (bt, N, Nm) f32
        dots = dots - jnp.max(dots, axis=-1, keepdims=True)
        p = jnp.exp(dots)
        attn = p * pl.reciprocal(jnp.sum(p, axis=-1, keepdims=True), approx=True)

        ov = jnp.einsum('bqk,bkd->bqd', attn.astype(jnp.bfloat16), vh,
                        preferred_element_type=jnp.float32)     # (bt, N, dh) f32
        head_outs.append(ov)

    # Single full-depth output projection on the concatenated head outputs.
    out_heads = jnp.concatenate(head_outs, axis=-1).reshape(bt * N, inner)
    attn_out = jnp.dot(out_heads.astype(jnp.bfloat16), wo_ref[0],
                       preferred_element_type=jnp.float32) + bo_ref[0]
    x1 = attn_out + x2d                                         # residual

    # ---- Residual(PreNorm(FeedForward)) ----
    nx1 = _layernorm(x1, ln2g_ref[0], ln2b_ref[0]).astype(jnp.bfloat16)
    h1 = jnp.dot(nx1, w1_ref[0], preferred_element_type=jnp.float32) + b1_ref[0]
    h1 = _gelu_exact(h1)
    h2 = jnp.dot(h1.astype(jnp.bfloat16), w2_ref[0],
                 preferred_element_type=jnp.float32) + b2_ref[0]
    new_x = (h2 + x1).reshape(bt, N, D)

    xacc_ref[...] = new_x

    @pl.when(layer == n_layers - 1)
    def _():
        o_ref[...] = new_x.astype(o_ref.dtype)


# ------------------------- parameter packing (host side) ----------------------

def _pack_params(layers, *, compute_dtype=jnp.bfloat16):
    # Keep matmul weights in their natural (D, inner) / (inner, D) /
    # (D, mlp) / (mlp, D) layouts: no per-head splitting, no dh<128 lane
    # padding in HBM/VMEM.
    def stack(name):
        return jnp.stack([p[name] for p in layers], axis=0)

    return dict(
        ln1_g=stack('ln1_g'), ln1_b=stack('ln1_b'),
        wq=stack('wq').astype(compute_dtype),    # (depth, D, inner)
        wk=stack('wk').astype(compute_dtype),
        wv=stack('wv').astype(compute_dtype),
        wo=stack('wo').astype(compute_dtype),    # (depth, inner, D)
        bo=stack('bo'),
        ln2_g=stack('ln2_g'), ln2_b=stack('ln2_b'),
        w1=stack('w1').astype(compute_dtype), b1=stack('b1'),
        w2=stack('w2').astype(compute_dtype), b2=stack('b2'),
    )


def _vmem_budget_bytes():
    # v5e/v6e: 128 MiB physical -> ~112 MiB budget; v7x: 64 MiB -> ~56 MiB.
    try:
        cap = int(pltpu.get_tpu_info().vmem_capacity_bytes)
        return max(32 << 20, int(cap * 0.875))
    except Exception:
        return 64 << 20


# --------------------------------- wrapper -----------------------------------

def transformer_decoder(x, m, layers, *, dim, heads, dim_head,
                        batch_tile=None, compute_dtype=jnp.bfloat16):
    B, N, D = x.shape
    Bm, Nm, Dm = m.shape
    assert (B, D) == (Bm, Dm) and D == dim
    depth = len(layers)
    inner = heads * dim_head
    mlp_dim = layers[0]['w1'].shape[1]
    scale = dim ** (-0.5)            # Cross_Attention uses dim**-0.5 (not dim_head)

    if batch_tile is None:
        # >=2 blocks on the parallel axis keeps v7x's second TensorCore busy.
        batch_tile = B // 2 if (B >= 2 and B % 2 == 0) else B
    assert B % batch_tile == 0

    s = _pack_params(layers, compute_dtype=compute_dtype)

    # --- derive vmem_limit_bytes from resident-buffer arithmetic ---
    wb = jnp.dtype(compute_dtype).itemsize
    R, Rm = batch_tile * N, batch_tile * Nm
    w_block = (3 * dim * inner + inner * dim + dim * mlp_dim + mlp_dim * dim) * wb \
              + (6 * dim + mlp_dim) * 4                      # LN params + biases (f32)
    act_in = (R * dim + Rm * dim) * 4                        # x, m input blocks (f32)
    out_block = R * dim * 4
    scratch_b = (R * dim + Rm * dim) * 4                     # xacc + macc
    working = ((R + 2 * Rm) * inner                          # fused q/k/v (f32)
               + 2 * batch_tile * N * Nm                     # dots + p (per head)
               + R * inner                                   # concat head outputs
               + R * mlp_dim                                 # FFN hidden (f32)
               + 4 * R * dim) * 4                            # x1/nx1/h2/temporaries
    need = 2 * (w_block + act_in + out_block) + scratch_b + working + (8 << 20)
    vmem_limit = int(min(_vmem_budget_bytes(), max(need, 32 << 20)))

    grid = (B // batch_tile, depth)

    def act_spec(seq):
        return pl.BlockSpec((batch_tile, seq, dim), lambda i, l: (i, 0, 0))

    def layer_spec(arr):             # stacked weights: block = one layer's slab
        nzero = arr.ndim - 1
        return pl.BlockSpec((1,) + tuple(arr.shape[1:]),
                            lambda i, l: (l,) + (0,) * nzero)

    kern = functools.partial(decoder_stack_kernel, scale=scale,
                             heads=heads, dim_head=dim_head)

    return pl.pallas_call(
        kern,
        out_shape=jax.ShapeDtypeStruct((B, N, dim), x.dtype),
        grid=grid,
        in_specs=[
            act_spec(N), act_spec(Nm),
            layer_spec(s['ln1_g']), layer_spec(s['ln1_b']),
            layer_spec(s['wq']), layer_spec(s['wk']), layer_spec(s['wv']),
            layer_spec(s['wo']), layer_spec(s['bo']),
            layer_spec(s['ln2_g']), layer_spec(s['ln2_b']),
            layer_spec(s['w1']), layer_spec(s['b1']),
            layer_spec(s['w2']), layer_spec(s['b2']),
        ],
        out_specs=pl.BlockSpec((batch_tile, N, dim), lambda i, l: (i, 0, 0)),
        scratch_shapes=[pltpu.VMEM((batch_tile, N, dim), jnp.float32),
                        pltpu.VMEM((batch_tile, Nm, dim), jnp.float32)],
        compiler_params=pltpu.CompilerParams(
            dimension_semantics=("parallel", "arbitrary"),
            vmem_limit_bytes=vmem_limit),
    )(x, m,
      s['ln1_g'], s['ln1_b'],
      s['wq'], s['wk'], s['wv'], s['wo'], s['bo'],
      s['ln2_g'], s['ln2_b'],
      s['w1'], s['b1'], s['w2'], s['b2'])


# -------------------------- parameter initialization --------------------------

def init_params(key, depth, dim, heads, dim_head, mlp_dim):
    inner = heads * dim_head

    def lin_w(k, fan_in, fan_out):
        bound = 1.0 / math.sqrt(fan_in)
        return jax.random.uniform(k, (fan_in, fan_out), jnp.float32, -bound, bound)

    def lin_b(k, fan_in, fan_out):
        bound = 1.0 / math.sqrt(fan_in)
        return jax.random.uniform(k, (1, fan_out), jnp.float32, -bound, bound)

    layers = []
    for i in range(depth):
        ks = jax.random.split(jax.random.fold_in(key, i), 10)
        layers.append(dict(
            ln1_g=jnp.ones((1, dim), jnp.float32),
            ln1_b=jnp.zeros((1, dim), jnp.float32),
            wq=lin_w(ks[0], dim, inner),
            wk=lin_w(ks[1], dim, inner),
            wv=lin_w(ks[2], dim, inner),
            wo=lin_w(ks[3], inner, dim),
            bo=lin_b(ks[4], inner, dim),
            ln2_g=jnp.ones((1, dim), jnp.float32),
            ln2_b=jnp.zeros((1, dim), jnp.float32),
            w1=lin_w(ks[5], dim, mlp_dim),
            b1=lin_b(ks[6], dim, mlp_dim),
            w2=lin_w(ks[7], mlp_dim, dim),
            b2=lin_b(ks[8], mlp_dim, dim),
        ))
    return layers


# ------------------------------ pure-JAX reference ----------------------------
# Mirrors the module math; matmul operands cast to bf16 (f32 accumulation) to
# mirror the kernel's MXU precision so the comparison stays tight.

def ref_forward(x, m, layers, *, dim, heads, dim_head, compute_dtype=jnp.bfloat16):
    scale = dim ** (-0.5)
    dh = dim_head

    def ln(t, g, b):
        mu = t.mean(-1, keepdims=True)
        var = ((t - mu) ** 2).mean(-1, keepdims=True)
        return (t - mu) * jax.lax.rsqrt(var + 1e-5) * g + b

    def mm(a, w):
        return jnp.dot(a.astype(compute_dtype), w.astype(compute_dtype),
                       preferred_element_type=jnp.float32)

    B, N, D = x.shape
    for p in layers:
        nx = ln(x, p['ln1_g'], p['ln1_b'])
        nm = ln(m, p['ln1_g'], p['ln1_b'])
        q = mm(nx, p['wq']) * scale
        k = mm(nm, p['wk'])
        v = mm(nm, p['wv'])

        def split(t):
            b, n, _ = t.shape
            return t.reshape(b, n, heads, dh).transpose(0, 2, 1, 3)

        qh, kh, vh = split(q), split(k), split(v)
        dots = jnp.einsum('bhid,bhjd->bhij',
                          qh.astype(compute_dtype), kh.astype(compute_dtype),
                          preferred_element_type=jnp.float32)
        attn = jax.nn.softmax(dots, axis=-1)
        out = jnp.einsum('bhij,bhjd->bhid',
                         attn.astype(compute_dtype), vh.astype(compute_dtype),
                         preferred_element_type=jnp.float32)
        out = out.transpose(0, 2, 1, 3).reshape(B, N, heads * dh)
        x = mm(out, p['wo']) + p['bo'] + x

        nx2 = ln(x, p['ln2_g'], p['ln2_b'])
        h = jax.nn.gelu(mm(nx2, p['w1']) + p['b1'], approximate=False)
        x = mm(h, p['w2']) + p['b2'] + x
    return x


# ----------------------------------- main -------------------------------------

if __name__ == "__main__":
    B, N, Nm = 2, 8, 16
    dim, depth, heads, dim_head, mlp_dim = 32, 2, 4, 8, 64

    key = jax.random.PRNGKey(0)
    kx, km, kp = jax.random.split(key, 3)
    x = jax.random.normal(kx, (B, N, dim), jnp.float32)
    m = jax.random.normal(km, (B, Nm, dim), jnp.float32)
    layers = init_params(kp, depth, dim, heads, dim_head, mlp_dim)

    out = transformer_decoder(x, m, layers, dim=dim, heads=heads, dim_head=dim_head)
    out = jax.block_until_ready(out)

    ref = jax.block_until_ready(
        ref_forward(x, m, layers, dim=dim, heads=heads, dim_head=dim_head))

    assert out.shape == (B, N, dim), out.shape
    max_err = float(jnp.max(jnp.abs(out - ref)))
    assert jnp.allclose(out, ref, rtol=1e-2, atol=1e-2), max_err
    print("KERNEL_OK")
</pallas_src>

<mosaic_0001>
module attributes {stable_mosaic.version = 11 : i64} {
  func.func @decoder_stack_kernel(%arg0: i32, %arg1: i32, %arg2: memref<1x8x32xf32, #tpu.memory_space<vmem>>, %arg3: memref<1x16x32xf32, #tpu.memory_space<vmem>>, %arg4: memref<1x1x32xf32, #tpu.memory_space<vmem>>, %arg5: memref<1x1x32xf32, #tpu.memory_space<vmem>>, %arg6: memref<1x32x32xbf16, #tpu.memory_space<vmem>>, %arg7: memref<1x32x32xbf16, #tpu.memory_space<vmem>>, %arg8: memref<1x32x32xbf16, #tpu.memory_space<vmem>>, %arg9: memref<1x32x32xbf16, #tpu.memory_space<vmem>>, %arg10: memref<1x1x32xf32, #tpu.memory_space<vmem>>, %arg11: memref<1x1x32xf32, #tpu.memory_space<vmem>>, %arg12: memref<1x1x32xf32, #tpu.memory_space<vmem>>, %arg13: memref<1x32x64xbf16, #tpu.memory_space<vmem>>, %arg14: memref<1x1x64xf32, #tpu.memory_space<vmem>>, %arg15: memref<1x64x32xbf16, #tpu.memory_space<vmem>>, %arg16: memref<1x1x32xf32, #tpu.memory_space<vmem>>, %arg17: memref<1x8x32xf32, #tpu.memory_space<vmem>>, %arg18: memref<1x8x32xf32, #tpu.memory_space<vmem>>, %arg19: memref<1x16x32xf32, #tpu.memory_space<vmem>>) attributes {dimension_semantics = [#tpu.dimension_semantics<parallel>, #tpu.dimension_semantics<arbitrary>], iteration_bounds = array<i64: 2, 2>, scalar_prefetch = 0 : i64, scratch_operands = 2 : i64, tpu.core_type = #tpu.core_type<tc>, window_params = [{transform_indices = @transform_0, window_bounds = array<i64: 1, 8, 32>}, {transform_indices = @transform_1, window_bounds = array<i64: 1, 16, 32>}, {transform_indices = @transform_2, window_bounds = array<i64: 1, 1, 32>}, {transform_indices = @transform_3, window_bounds = array<i64: 1, 1, 32>}, {transform_indices = @transform_4, window_bounds = array<i64: 1, 32, 32>}, {transform_indices = @transform_5, window_bounds = array<i64: 1, 32, 32>}, {transform_indices = @transform_6, window_bounds = array<i64: 1, 32, 32>}, {transform_indices = @transform_7, window_bounds = array<i64: 1, 32, 32>}, {transform_indices = @transform_8, window_bounds = array<i64: 1, 1, 32>}, {transform_indices = @transform_9, window_bounds = array<i64: 1, 1, 32>}, {transform_indices = @transform_10, window_bounds = array<i64: 1, 1, 32>}, {transform_indices = @transform_11, window_bounds = array<i64: 1, 32, 64>}, {transform_indices = @transform_12, window_bounds = array<i64: 1, 1, 64>}, {transform_indices = @transform_13, window_bounds = array<i64: 1, 64, 32>}, {transform_indices = @transform_14, window_bounds = array<i64: 1, 1, 32>}, {transform_indices = @transform_15, window_bounds = array<i64: 1, 8, 32>}]} {
    %c0_i32 = arith.constant 0 : i32
    %0 = arith.cmpi eq, %arg1, %c0_i32 : i32
    %1 = arith.extui %0 : i1 to i32
    %c0_i32_0 = arith.constant 0 : i32
    %2 = arith.cmpi ne, %1, %c0_i32_0 : i32
    scf.if %2 {
      %c0_102 = arith.constant 0 : index
      %c0_103 = arith.constant 0 : index
      %c0_104 = arith.constant 0 : index
      %244 = vector.load %arg2[%c0_102, %c0_103, %c0_104] : memref<1x8x32xf32, #tpu.memory_space<vmem>>, vector<1x8x32xf32>
      %c0_105 = arith.constant 0 : index
      %c0_106 = arith.constant 0 : index
      %c0_107 = arith.constant 0 : index
      %245 = vector.load %arg18[%c0_105, %c0_106, %c0_107] : memref<1x8x32xf32, #tpu.memory_space<vmem>>, vector<1x8x32xf32>
      tpu.vector_store %arg18[%c0_105, %c0_106, %c0_107], %244 {strides = array<i32>} : memref<1x8x32xf32, #tpu.memory_space<vmem>>, vector<1x8x32xf32>,
      %c0_108 = arith.constant 0 : index
      %c0_109 = arith.constant 0 : index
      %c0_110 = arith.constant 0 : index
      %246 = vector.load %arg3[%c0_108, %c0_109, %c0_110] : memref<1x16x32xf32, #tpu.memory_space<vmem>>, vector<1x16x32xf32>
      %c0_111 = arith.constant 0 : index
      %c0_112 = arith.constant 0 : index
      %c0_113 = arith.constant 0 : index
      %247 = vector.load %arg19[%c0_111, %c0_112, %c0_113] : memref<1x16x32xf32, #tpu.memory_space<vmem>>, vector<1x16x32xf32>
      tpu.vector_store %arg19[%c0_111, %c0_112, %c0_113], %246 {strides = array<i32>} : memref<1x16x32xf32, #tpu.memory_space<vmem>>, vector<1x16x32xf32>,
    } else {
    }
    %c0 = arith.constant 0 : index
    %c0_1 = arith.constant 0 : index
    %c0_2 = arith.constant 0 : index
    %3 = vector.load %arg18[%c0, %c0_1, %c0_2] : memref<1x8x32xf32, #tpu.memory_space<vmem>>, vector<1x8x32xf32>
    %4 = vector.shape_cast %3 : vector<1x8x32xf32> to vector<8x32xf32>
    %c0_3 = arith.constant 0 : index
    %c0_4 = arith.constant 0 : index
    %c0_5 = arith.constant 0 : index
    %5 = vector.load %arg19[%c0_3, %c0_4, %c0_5] : memref<1x16x32xf32, #tpu.memory_space<vmem>>, vector<1x16x32xf32>
    %6 = vector.shape_cast %5 : vector<1x16x32xf32> to vector<16x32xf32>
    %c0_6 = arith.constant 0 : index
    %c0_7 = arith.constant 0 : index
    %c0_8 = arith.constant 0 : index
    %7 = vector.load %arg4[%c0_6, %c0_7, %c0_8] : memref<1x1x32xf32, #tpu.memory_space<vmem>>, vector<1x1x32xf32>
    %8 = vector.shape_cast %7 : vector<1x1x32xf32> to vector<1x32xf32>
    %c0_9 = arith.constant 0 : index
    %c0_10 = arith.constant 0 : index
    %c0_11 = arith.constant 0 : index
    %9 = vector.load %arg5[%c0_9, %c0_10, %c0_11] : memref<1x1x32xf32, #tpu.memory_space<vmem>>, vector<1x1x32xf32>
    %10 = vector.shape_cast %9 : vector<1x1x32xf32> to vector<1x32xf32>
    %cst = arith.constant dense<0.000000e+00> : vector<8xf32>
    %11 = vector.multi_reduction <add>, %4, %cst [1] : vector<8x32xf32> to vector<8xf32>
    %12 = vector.shape_cast %11 : vector<8xf32> to vector<8x1xf32>
    %cst_12 = arith.constant 3.200000e+01 : f32
    %13 = vector.broadcast %cst_12 : f32 to vector<8x1xf32>
    %14 = arith.divf %12, %13 : vector<8x1xf32>
    %15 = vector.broadcast %14 : vector<8x1xf32> to vector<8x32xf32>
    %16 = arith.subf %4, %15 : vector<8x32xf32>
    %17 = vector.broadcast %14 : vector<8x1xf32> to vector<8x32xf32>
    %18 = arith.subf %4, %17 : vector<8x32xf32>
    %19 = arith.mulf %16, %18 : vector<8x32xf32>
    %cst_13 = arith.constant dense<0.000000e+00> : vector<8xf32>
    %20 = vector.multi_reduction <add>, %19, %cst_13 [1] : vector<8x32xf32> to vector<8xf32>
    %21 = vector.shape_cast %20 : vector<8xf32> to vector<8x1xf32>
    %cst_14 = arith.constant 3.200000e+01 : f32
    %22 = vector.broadcast %cst_14 : f32 to vector<8x1xf32>
    %23 = arith.divf %21, %22 : vector<8x1xf32>
    %24 = vector.broadcast %14 : vector<8x1xf32> to vector<8x32xf32>
    %25 = arith.subf %4, %24 : vector<8x32xf32>
    %cst_15 = arith.constant 9.99999974E-6 : f32
    %26 = vector.broadcast %cst_15 : f32 to vector<8x1xf32>
    %27 = arith.addf %23, %26 : vector<8x1xf32>
    %28 = math.rsqrt %27 : vector<8x1xf32>
    %29 = vector.broadcast %28 : vector<8x1xf32> to vector<8x32xf32>
    %30 = arith.mulf %25, %29 : vector<8x32xf32>
    %31 = vector.broadcast %8 : vector<1x32xf32> to vector<8x32xf32>
    %32 = arith.mulf %30, %31 : vector<8x32xf32>
    %33 = vector.broadcast %10 : vector<1x32xf32> to vector<8x32xf32>
    %34 = arith.addf %32, %33 : vector<8x32xf32>
    %35 = arith.truncf %34 : vector<8x32xf32> to vector<8x32xbf16>
    %cst_16 = arith.constant dense<0.000000e+00> : vector<16xf32>
    %36 = vector.multi_reduction <add>, %6, %cst_16 [1] : vector<16x32xf32> to vector<16xf32>
    %37 = vector.shape_cast %36 : vector<16xf32> to vector<16x1xf32>
    %cst_17 = arith.constant 3.200000e+01 : f32
    %38 = vector.broadcast %cst_17 : f32 to vector<16x1xf32>
    %39 = arith.divf %37, %38 : vector<16x1xf32>
    %40 = vector.broadcast %39 : vector<16x1xf32> to vector<16x32xf32>
    %41 = arith.subf %6, %40 : vector<16x32xf32>
    %42 = vector.broadcast %39 : vector<16x1xf32> to vector<16x32xf32>
    %43 = arith.subf %6, %42 : vector<16x32xf32>
    %44 = arith.mulf %41, %43 : vector<16x32xf32>
    %cst_18 = arith.constant dense<0.000000e+00> : vector<16xf32>
    %45 = vector.multi_reduction <add>, %44, %cst_18 [1] : vector<16x32xf32> to vector<16xf32>
    %46 = vector.shape_cast %45 : vector<16xf32> to vector<16x1xf32>
    %cst_19 = arith.constant 3.200000e+01 : f32
    %47 = vector.broadcast %cst_19 : f32 to vector<16x1xf32>
    %48 = arith.divf %46, %47 : vector<16x1xf32>
    %49 = vector.broadcast %39 : vector<16x1xf32> to vector<16x32xf32>
    %50 = arith.subf %6, %49 : vector<16x32xf32>
    %cst_20 = arith.constant 9.99999974E-6 : f32
    %51 = vector.broadcast %cst_20 : f32 to vector<16x1xf32>
    %52 = arith.addf %48, %51 : vector<16x1xf32>
    %53 = math.rsqrt %52 : vector<16x1xf32>
    %54 = vector.broadcast %53 : vector<16x1xf32> to vector<16x32xf32>
    %55 = arith.mulf %50, %54 : vector<16x32xf32>
    %56 = vector.broadcast %8 : vector<1x32xf32> to vector<16x32xf32>
    %57 = arith.mulf %55, %56 : vector<16x32xf32>
    %58 = vector.broadcast %10 : vector<1x32xf32> to vector<16x32xf32>
    %59 = arith.addf %57, %58 : vector<16x32xf32>
    %60 = arith.truncf %59 : vector<16x32xf32> to vector<16x32xbf16>
    %c0_21 = arith.constant 0 : index
    %c0_22 = arith.constant 0 : index
    %c0_23 = arith.constant 0 : index
    %61 = vector.load %arg6[%c0_21, %c0_22, %c0_23] : memref<1x32x32xbf16, #tpu.memory_space<vmem>>, vector<1x32x32xbf16>
    %62 = vector.shape_cast %61 : vector<1x32x32xbf16> to vector<32x32xbf16>
    %cst_24 = arith.constant dense<0.000000e+00> : vector<8x32xf32>
    %63 = tpu.matmul %35, %62, %cst_24 {dimension_numbers = #tpu.dot_dimension_numbers<[1], [0], [0], [1], [0, 0, 1, 1], [], []>} : vector<8x32xbf16>, vector<32x32xbf16>, vector<8x32xf32> -> vector<8x32xf32>
    %cst_25 = arith.constant 0.176776692 : f32
    %64 = vector.broadcast %cst_25 : f32 to vector<8x32xf32>
    %65 = arith.mulf %63, %64 : vector<8x32xf32>
    %c0_26 = arith.constant 0 : index
    %c0_27 = arith.constant 0 : index
    %c0_28 = arith.constant 0 : index
    %66 = vector.load %arg7[%c0_26, %c0_27, %c0_28] : memref<1x32x32xbf16, #tpu.memory_space<vmem>>, vector<1x32x32xbf16>
    %67 = vector.shape_cast %66 : vector<1x32x32xbf16> to vector<32x32xbf16>
    %cst_29 = arith.constant dense<0.000000e+00> : vector<16x32xf32>
    %68 = tpu.matmul %60, %67, %cst_29 {dimension_numbers = #tpu.dot_dimension_numbers<[1], [0], [0], [1], [0, 0, 1, 1], [], []>} : vector<16x32xbf16>, vector<32x32xbf16>, vector<16x32xf32> -> vector<16x32xf32>
    %c0_30 = arith.constant 0 : index
    %c0_31 = arith.constant 0 : index
    %c0_32 = arith.constant 0 : index
    %69 = vector.load %arg8[%c0_30, %c0_31, %c0_32] : memref<1x32x32xbf16, #tpu.memory_space<vmem>>, vector<1x32x32xbf16>
    %70 = vector.shape_cast %69 : vector<1x32x32xbf16> to vector<32x32xbf16>
    %cst_33 = arith.constant dense<0.000000e+00> : vector<16x32xf32>
    %71 = tpu.matmul %60, %70, %cst_33 {dimension_numbers = #tpu.dot_dimension_numbers<[1], [0], [0], [1], [0, 0, 1, 1], [], []>} : vector<16x32xbf16>, vector<32x32xbf16>, vector<16x32xf32> -> vector<16x32xf32>
    %72 = vector.shape_cast %65 : vector<8x32xf32> to vector<1x8x32xf32>
    %73 = arith.truncf %72 : vector<1x8x32xf32> to vector<1x8x32xbf16>
    %74 = vector.shape_cast %68 : vector<16x32xf32> to vector<1x16x32xf32>
    %75 = arith.truncf %74 : vector<1x16x32xf32> to vector<1x16x32xbf16>
    %76 = vector.shape_cast %71 : vector<16x32xf32> to vector<1x16x32xf32>
    %77 = arith.truncf %76 : vector<1x16x32xf32> to vector<1x16x32xbf16>
    %78 = vector.extract_strided_slice %73 {offsets = [0, 0, 0], sizes = [1, 8, 8], strides = [1, 1, 1]} : vector<1x8x32xbf16> to vector<1x8x8xbf16>
    %79 = vector.extract_strided_slice %75 {offsets = [0, 0, 0], sizes = [1, 16, 8], strides = [1, 1, 1]} : vector<1x16x32xbf16> to vector<1x16x8xbf16>
    %80 = vector.extract_strided_slice %77 {offsets = [0, 0, 0], sizes = [1, 16, 8], strides = [1, 1, 1]} : vector<1x16x32xbf16> to vector<1x16x8xbf16>
    "tpu.trace_start"() <{level = 10 : i32, message = "bqd,bkd->bqk"}> : () -> ()
    %cst_34 = arith.constant dense<0.000000e+00> : vector<1x8x16xf32>
    %81 = tpu.matmul %78, %79, %cst_34 {dimension_numbers = #tpu.dot_dimension_numbers<[2], [2], [1], [1], [0, 0, 0, 1, 1, 1], [0], [0]>} : vector<1x8x8xbf16>, vector<1x16x8xbf16>, vector<1x8x16xf32> -> vector<1x8x16xf32>
    "tpu.trace_stop"() : () -> ()
    %cst_35 = arith.constant dense<0xFF800000> : vector<1x8xf32>
    %82 = vector.multi_reduction <maximumf>, %81, %cst_35 [2] : vector<1x8x16xf32> to vector<1x8xf32>
    %83 = vector.shape_cast %82 : vector<1x8xf32> to vector<1x8x1xf32>
    %84 = vector.broadcast %83 : vector<1x8x1xf32> to vector<1x8x16xf32>
    %85 = arith.subf %81, %84 : vector<1x8x16xf32>
    %86 = math.exp %85 : vector<1x8x16xf32>
    %cst_36 = arith.constant dense<0.000000e+00> : vector<1x8xf32>
    %87 = vector.multi_reduction <add>, %86, %cst_36 [2] : vector<1x8x16xf32> to vector<1x8xf32>
    %88 = vector.shape_cast %87 : vector<1x8xf32> to vector<1x8x1xf32>
    %89 = tpu.reciprocal %88 {approx = true} : vector<1x8x1xf32> -> vector<1x8x1xf32>
    %90 = vector.broadcast %89 : vector<1x8x1xf32> to vector<1x8x16xf32>
    %91 = arith.mulf %86, %90 : vector<1x8x16xf32>
    %92 = arith.truncf %91 : vector<1x8x16xf32> to vector<1x8x16xbf16>
    "tpu.trace_start"() <{level = 10 : i32, message = "bqk,bkd->bqd"}> : () -> ()
    %cst_37 = arith.constant dense<0.000000e+00> : vector<1x8x8xf32>
    %93 = tpu.matmul %92, %80, %cst_37 {dimension_numbers = #tpu.dot_dimension_numbers<[2], [1], [1], [2], [0, 0, 0, 1, 1, 2], [0], [0]>} : vector<1x8x16xbf16>, vector<1x16x8xbf16>, vector<1x8x8xf32> -> vector<1x8x8xf32>
    "tpu.trace_stop"() : () -> ()
    %94 = vector.extract_strided_slice %73 {offsets = [0, 0, 8], sizes = [1, 8, 8], strides = [1, 1, 1]} : vector<1x8x32xbf16> to vector<1x8x8xbf16>
    %95 = vector.extract_strided_slice %75 {offsets = [0, 0, 8], sizes = [1, 16, 8], strides = [1, 1, 1]} : vector<1x16x32xbf16> to vector<1x16x8xbf16>
    %96 = vector.extract_strided_slice %77 {offsets = [0, 0, 8], sizes = [1, 16, 8], strides = [1, 1, 1]} : vector<1x16x32xbf16> to vector<1x16x8xbf16>
    "tpu.trace_start"() <{level = 10 : i32, message = "bqd,bkd->bqk"}> : () -> ()
    %cst_38 = arith.constant dense<0.000000e+00> : vector<1x8x16xf32>
    %97 = tpu.matmul %94, %95, %cst_38 {dimension_numbers = #tpu.dot_dimension_numbers<[2], [2], [1], [1], [0, 0, 0, 1, 1, 1], [0], [0]>} : vector<1x8x8xbf16>, vector<1x16x8xbf16>, vector<1x8x16xf32> -> vector<1x8x16xf32>
    "tpu.trace_stop"() : () -> ()
    %cst_39 = arith.constant dense<0xFF800000> : vector<1x8xf32>
    %98 = vector.multi_reduction <maximumf>, %97, %cst_39 [2] : vector<1x8x16xf32> to vector<1x8xf32>
    %99 = vector.shape_cast %98 : vector<1x8xf32> to vector<1x8x1xf32>
    %100 = vector.broadcast %99 : vector<1x8x1xf32> to vector<1x8x16xf32>
    %101 = arith.subf %97, %100 : vector<1x8x16xf32>
    %102 = math.exp %101 : vector<1x8x16xf32>
    %cst_40 = arith.constant dense<0.000000e+00> : vector<1x8xf32>
    %103 = vector.multi_reduction <add>, %102, %cst_40 [2] : vector<1x8x16xf32> to vector<1x8xf32>
    %104 = vector.shape_cast %103 : vector<1x8xf32> to vector<1x8x1xf32>
    %105 = tpu.reciprocal %104 {approx = true} : vector<1x8x1xf32> -> vector<1x8x1xf32>
    %106 = vector.broadcast %105 : vector<1x8x1xf32> to vector<1x8x16xf32>
    %107 = arith.mulf %102, %106 : vector<1x8x16xf32>
    %108 = arith.truncf %107 : vector<1x8x16xf32> to vector<1x8x16xbf16>
    "tpu.trace_start"() <{level = 10 : i32, message = "bqk,bkd->bqd"}> : () -> ()
    %cst_41 = arith.constant dense<0.000000e+00> : vector<1x8x8xf32>
    %109 = tpu.matmul %108, %96, %cst_41 {dimension_numbers = #tpu.dot_dimension_numbers<[2], [1], [1], [2], [0, 0, 0, 1, 1, 2], [0], [0]>} : vector<1x8x16xbf16>, vector<1x16x8xbf16>, vector<1x8x8xf32> -> vector<1x8x8xf32>
    "tpu.trace_stop"() : () -> ()
    %110 = vector.extract_strided_slice %73 {offsets = [0, 0, 16], sizes = [1, 8, 8], strides = [1, 1, 1]} : vector<1x8x32xbf16> to vector<1x8x8xbf16>
    %111 = vector.extract_strided_slice %75 {offsets = [0, 0, 16], sizes = [1, 16, 8], strides = [1, 1, 1]} : vector<1x16x32xbf16> to vector<1x16x8xbf16>
    %112 = vector.extract_strided_slice %77 {offsets = [0, 0, 16], sizes = [1, 16, 8], strides = [1, 1, 1]} : vector<1x16x32xbf16> to vector<1x16x8xbf16>
    "tpu.trace_start"() <{level = 10 : i32, message = "bqd,bkd->bqk"}> : () -> ()
    %cst_42 = arith.constant dense<0.000000e+00> : vector<1x8x16xf32>
    %113 = tpu.matmul %110, %111, %cst_42 {dimension_numbers = #tpu.dot_dimension_numbers<[2], [2], [1], [1], [0, 0, 0, 1, 1, 1], [0], [0]>} : vector<1x8x8xbf16>, vector<1x16x8xbf16>, vector<1x8x16xf32> -> vector<1x8x16xf32>
    "tpu.trace_stop"() : () -> ()
    %cst_43 = arith.constant dense<0xFF800000> : vector<1x8xf32>
    %114 = vector.multi_reduction <maximumf>, %113, %cst_43 [2] : vector<1x8x16xf32> to vector<1x8xf32>
    %115 = vector.shape_cast %114 : vector<1x8xf32> to vector<1x8x1xf32>
    %116 = vector.broadcast %115 : vector<1x8x1xf32> to vector<1x8x16xf32>
    %117 = arith.subf %113, %116 : vector<1x8x16xf32>
    %118 = math.exp %117 : vector<1x8x16xf32>
    %cst_44 = arith.constant dense<0.000000e+00> : vector<1x8xf32>
    %119 = vector.multi_reduction <add>, %118, %cst_44 [2] : vector<1x8x16xf32> to vector<1x8xf32>
    %120 = vector.shape_cast %119 : vector<1x8xf32> to vector<1x8x1xf32>
    %121 = tpu.reciprocal %120 {approx = true} : vector<1x8x1xf32> -> vector<1x8x1xf32>
    %122 = vector.broadcast %121 : vector<1x8x1xf32> to vector<1x8x16xf32>
    %123 = arith.mulf %118, %122 : vector<1x8x16xf32>
    %124 = arith.truncf %123 : vector<1x8x16xf32> to vector<1x8x16xbf16>
    "tpu.trace_start"() <{level = 10 : i32, message = "bqk,bkd->bqd"}> : () -> ()
    %cst_45 = arith.constant dense<0.000000e+00> : vector<1x8x8xf32>
    %125 = tpu.matmul %124, %112, %cst_45 {dimension_numbers = #tpu.dot_dimension_numbers<[2], [1], [1], [2], [0, 0, 0, 1, 1, 2], [0], [0]>} : vector<1x8x16xbf16>, vector<1x16x8xbf16>, vector<1x8x8xf32> -> vector<1x8x8xf32>
    "tpu.trace_stop"() : () -> ()
    %126 = vector.extract_strided_slice %73 {offsets = [0, 0, 24], sizes = [1, 8, 8], strides = [1, 1, 1]} : vector<1x8x32xbf16> to vector<1x8x8xbf16>
    %127 = vector.extract_strided_slice %75 {offsets = [0, 0, 24], sizes = [1, 16, 8], strides = [1, 1, 1]} : vector<1x16x32xbf16> to vector<1x16x8xbf16>
    %128 = vector.extract_strided_slice %77 {offsets = [0, 0, 24], sizes = [1, 16, 8], strides = [1, 1, 1]} : vector<1x16x32xbf16> to vector<1x16x8xbf16>
    "tpu.trace_start"() <{level = 10 : i32, message = "bqd,bkd->bqk"}> : () -> ()
    %cst_46 = arith.constant dense<0.000000e+00> : vector<1x8x16xf32>
    %129 = tpu.matmul %126, %127, %cst_46 {dimension_numbers = #tpu.dot_dimension_numbers<[2], [2], [1], [1], [0, 0, 0, 1, 1, 1], [0], [0]>} : vector<1x8x8xbf16>, vector<1x16x8xbf16>, vector<1x8x16xf32> -> vector<1x8x16xf32>
    "tpu.trace_stop"() : () -> ()
    %cst_47 = arith.constant dense<0xFF800000> : vector<1x8xf32>
    %130 = vector.multi_reduction <maximumf>, %129, %cst_47 [2] : vector<1x8x16xf32> to vector<1x8xf32>
    %131 = vector.shape_cast %130 : vector<1x8xf32> to vector<1x8x1xf32>
    %132 = vector.broadcast %131 : vector<1x8x1xf32> to vector<1x8x16xf32>
    %133 = arith.subf %129, %132 : vector<1x8x16xf32>
    %134 = math.exp %133 : vector<1x8x16xf32>
    %cst_48 = arith.constant dense<0.000000e+00> : vector<1x8xf32>
    %135 = vector.multi_reduction <add>, %134, %cst_48 [2] : vector<1x8x16xf32> to vector<1x8xf32>
    %136 = vector.shape_cast %135 : vector<1x8xf32> to vector<1x8x1xf32>
    %137 = tpu.reciprocal %136 {approx = true} : vector<1x8x1xf32> -> vector<1x8x1xf32>
    %138 = vector.broadcast %137 : vector<1x8x1xf32> to vector<1x8x16xf32>
    %139 = arith.mulf %134, %138 : vector<1x8x16xf32>
    %140 = arith.truncf %139 : vector<1x8x16xf32> to vector<1x8x16xbf16>
    "tpu.trace_start"() <{level = 10 : i32, message = "bqk,bkd->bqd"}> : () -> ()
    %cst_49 = arith.constant dense<0.000000e+00> : vector<1x8x8xf32>
    %141 = tpu.matmul %140, %128, %cst_49 {dimension_numbers = #tpu.dot_dimension_numbers<[2], [1], [1], [2], [0, 0, 0, 1, 1, 2], [0], [0]>} : vector<1x8x16xbf16>, vector<1x16x8xbf16>, vector<1x8x8xf32> -> vector<1x8x8xf32>
    "tpu.trace_stop"() : () -> ()
    %142 = tpu.concatenate %93, %109, %125, %141 in 2 : vector<1x8x8xf32>, vector<1x8x8xf32>, vector<1x8x8xf32>, vector<1x8x8xf32> -> vector<1x8x32xf32>
    %143 = vector.shape_cast %142 : vector<1x8x32xf32> to vector<8x32xf32>
    %144 = arith.truncf %143 : vector<8x32xf32> to vector<8x32xbf16>
    %c0_50 = arith.constant 0 : index
    %c0_51 = arith.constant 0 : index
    %c0_52 = arith.constant 0 : index
    %145 = vector.load %arg9[%c0_50, %c0_51, %c0_52] : memref<1x32x32xbf16, #tpu.memory_space<vmem>>, vector<1x32x32xbf16>
    %146 = vector.shape_cast %145 : vector<1x32x32xbf16> to vector<32x32xbf16>
    %cst_53 = arith.constant dense<0.000000e+00> : vector<8x32xf32>
    %147 = tpu.matmul %144, %146, %cst_53 {dimension_numbers = #tpu.dot_dimension_numbers<[1], [0], [0], [1], [0, 0, 1, 1], [], []>} : vector<8x32xbf16>, vector<32x32xbf16>, vector<8x32xf32> -> vector<8x32xf32>
    %c0_54 = arith.constant 0 : index
    %c0_55 = arith.constant 0 : index
    %c0_56 = arith.constant 0 : index
    %148 = vector.load %arg10[%c0_54, %c0_55, %c0_56] : memref<1x1x32xf32, #tpu.memory_space<vmem>>, vector<1x1x32xf32>
    %149 = vector.shape_cast %148 : vector<1x1x32xf32> to vector<1x32xf32>
    %150 = vector.broadcast %149 : vector<1x32xf32> to vector<8x32xf32>
    %151 = arith.addf %147, %150 : vector<8x32xf32>
    %152 = arith.addf %151, %4 : vector<8x32xf32>
    %c0_57 = arith.constant 0 : index
    %c0_58 = arith.constant 0 : index
    %c0_59 = arith.constant 0 : index
    %153 = vector.load %arg11[%c0_57, %c0_58, %c0_59] : memref<1x1x32xf32, #tpu.memory_space<vmem>>, vector<1x1x32xf32>
    %154 = vector.shape_cast %153 : vector<1x1x32xf32> to vector<1x32xf32>
    %c0_60 = arith.constant 0 : index
    %c0_61 = arith.constant 0 : index
    %c0_62 = arith.constant 0 : index
    %155 = vector.load %arg12[%c0_60, %c0_61, %c0_62] : memref<1x1x32xf32, #tpu.memory_space<vmem>>, vector<1x1x32xf32>
    %156 = vector.shape_cast %155 : vector<1x1x32xf32> to vector<1x32xf32>
    %cst_63 = arith.constant dense<0.000000e+00> : vector<8xf32>
    %157 = vector.multi_reduction <add>, %152, %cst_63 [1] : vector<8x32xf32> to vector<8xf32>
    %158 = vector.shape_cast %157 : vector<8xf32> to vector<8x1xf32>
    %cst_64 = arith.constant 3.200000e+01 : f32
    %159 = vector.broadcast %cst_64 : f32 to vector<8x1xf32>
    %160 = arith.divf %158, %159 : vector<8x1xf32>
    %161 = vector.broadcast %160 : vector<8x1xf32> to vector<8x32xf32>
    %162 = arith.subf %152, %161 : vector<8x32xf32>
    %163 = vector.broadcast %160 : vector<8x1xf32> to vector<8x32xf32>
    %164 = arith.subf %152, %163 : vector<8x32xf32>
    %165 = arith.mulf %162, %164 : vector<8x32xf32>
    %cst_65 = arith.constant dense<0.000000e+00> : vector<8xf32>
    %166 = vector.multi_reduction <add>, %165, %cst_65 [1] : vector<8x32xf32> to vector<8xf32>
    %167 = vector.shape_cast %166 : vector<8xf32> to vector<8x1xf32>
    %cst_66 = arith.constant 3.200000e+01 : f32
    %168 = vector.broadcast %cst_66 : f32 to vector<8x1xf32>
    %169 = arith.divf %167, %168 : vector<8x1xf32>
    %170 = vector.broadcast %160 : vector<8x1xf32> to vector<8x32xf32>
    %171 = arith.subf %152, %170 : vector<8x32xf32>
    %cst_67 = arith.constant 9.99999974E-6 : f32
    %172 = vector.broadcast %cst_67 : f32 to vector<8x1xf32>
    %173 = arith.addf %169, %172 : vector<8x1xf32>
    %174 = math.rsqrt %173 : vector<8x1xf32>
    %175 = vector.broadcast %174 : vector<8x1xf32> to vector<8x32xf32>
    %176 = arith.mulf %171, %175 : vector<8x32xf32>
    %177 = vector.broadcast %154 : vector<1x32xf32> to vector<8x32xf32>
    %178 = arith.mulf %176, %177 : vector<8x32xf32>
    %179 = vector.broadcast %156 : vector<1x32xf32> to vector<8x32xf32>
    %180 = arith.addf %178, %179 : vector<8x32xf32>
    %181 = arith.truncf %180 : vector<8x32xf32> to vector<8x32xbf16>
    %c0_68 = arith.constant 0 : index
    %c0_69 = arith.constant 0 : index
    %c0_70 = arith.constant 0 : index
    %182 = vector.load %arg13[%c0_68, %c0_69, %c0_70] : memref<1x32x64xbf16, #tpu.memory_space<vmem>>, vector<1x32x64xbf16>
    %183 = vector.shape_cast %182 : vector<1x32x64xbf16> to vector<32x64xbf16>
    %cst_71 = arith.constant dense<0.000000e+00> : vector<8x64xf32>
    %184 = tpu.matmul %181, %183, %cst_71 {dimension_numbers = #tpu.dot_dimension_numbers<[1], [0], [0], [1], [0, 0, 1, 1], [], []>} : vector<8x32xbf16>, vector<32x64xbf16>, vector<8x64xf32> -> vector<8x64xf32>
    %c0_72 = arith.constant 0 : index
    %c0_73 = arith.constant 0 : index
    %c0_74 = arith.constant 0 : index
    %185 = vector.load %arg14[%c0_72, %c0_73, %c0_74] : memref<1x1x64xf32, #tpu.memory_space<vmem>>, vector<1x1x64xf32>
    %186 = vector.shape_cast %185 : vector<1x1x64xf32> to vector<1x64xf32>
    %187 = vector.broadcast %186 : vector<1x64xf32> to vector<8x64xf32>
    %188 = arith.addf %184, %187 : vector<8x64xf32>
    %cst_75 = arith.constant 5.000000e-01 : f32
    %189 = vector.broadcast %cst_75 : f32 to vector<8x64xf32>
    %190 = arith.mulf %189, %188 : vector<8x64xf32>
    %cst_76 = arith.constant 0.707106769 : f32
    %191 = vector.broadcast %cst_76 : f32 to vector<8x64xf32>
    %192 = arith.mulf %188, %191 : vector<8x64xf32>
    %cst_77 = arith.constant 0.000000e+00 : f32
    %193 = vector.broadcast %cst_77 : f32 to vector<8x64xf32>
    %194 = arith.cmpf oge, %192, %193 : vector<8x64xf32>
    %cst_78 = arith.constant 1.000000e+00 : f32
    %cst_79 = arith.constant -1.000000e+00 : f32
    %195 = vector.broadcast %cst_78 : f32 to vector<8x64xf32>
    %196 = vector.broadcast %cst_79 : f32 to vector<8x64xf32>
    %197 = arith.select %194, %195, %196 : vector<8x64xi1>, vector<8x64xf32>
    %198 = math.absf %192 : vector<8x64xf32>
    %cst_80 = arith.constant 0.327591091 : f32
    %199 = vector.broadcast %cst_80 : f32 to vector<8x64xf32>
    %200 = arith.mulf %199, %198 : vector<8x64xf32>
    %cst_81 = arith.constant 1.000000e+00 : f32
    %201 = vector.broadcast %cst_81 : f32 to vector<8x64xf32>
    %202 = arith.addf %201, %200 : vector<8x64xf32>
    %cst_82 = arith.constant 1.000000e+00 : f32
    %203 = vector.broadcast %cst_82 : f32 to vector<8x64xf32>
    %204 = arith.divf %203, %202 : vector<8x64xf32>
    %cst_83 = arith.constant 1.06140542 : f32
    %205 = vector.broadcast %cst_83 : f32 to vector<8x64xf32>
    %206 = arith.mulf %205, %204 : vector<8x64xf32>
    %cst_84 = arith.constant -1.45315206 : f32
    %207 = vector.broadcast %cst_84 : f32 to vector<8x64xf32>
    %208 = arith.addf %206, %207 : vector<8x64xf32>
    %209 = arith.mulf %208, %204 : vector<8x64xf32>
    %cst_85 = arith.constant 1.42141378 : f32
    %210 = vector.broadcast %cst_85 : f32 to vector<8x64xf32>
    %211 = arith.addf %209, %210 : vector<8x64xf32>
    %212 = arith.mulf %211, %204 : vector<8x64xf32>
    %cst_86 = arith.constant -0.284496725 : f32
    %213 = vector.broadcast %cst_86 : f32 to vector<8x64xf32>
    %214 = arith.addf %212, %213 : vector<8x64xf32>
    %215 = arith.mulf %214, %204 : vector<8x64xf32>
    %cst_87 = arith.constant 0.254829586 : f32
    %216 = vector.broadcast %cst_87 : f32 to vector<8x64xf32>
    %217 = arith.addf %215, %216 : vector<8x64xf32>
    %218 = arith.mulf %217, %204 : vector<8x64xf32>
    %cst_88 = arith.constant 0.000000e+00 : f32
    %219 = vector.broadcast %cst_88 : f32 to vector<8x64xf32>
    %220 = arith.subf %219, %198 : vector<8x64xf32>
    %221 = arith.mulf %220, %198 : vector<8x64xf32>
    %222 = math.exp %221 : vector<8x64xf32>
    %223 = arith.mulf %218, %222 : vector<8x64xf32>
    %cst_89 = arith.constant 1.000000e+00 : f32
    %224 = vector.broadcast %cst_89 : f32 to vector<8x64xf32>
    %225 = arith.subf %224, %223 : vector<8x64xf32>
    %226 = arith.mulf %197, %225 : vector<8x64xf32>
    %cst_90 = arith.constant 1.000000e+00 : f32
    %227 = vector.broadcast %cst_90 : f32 to vector<8x64xf32>
    %228 = arith.addf %227, %226 : vector<8x64xf32>
    %229 = arith.mulf %190, %228 : vector<8x64xf32>
    %230 = arith.truncf %229 : vector<8x64xf32> to vector<8x64xbf16>
    %c0_91 = arith.constant 0 : index
    %c0_92 = arith.constant 0 : index
    %c0_93 = arith.constant 0 : index
    %231 = vector.load %arg15[%c0_91, %c0_92, %c0_93] : memref<1x64x32xbf16, #tpu.memory_space<vmem>>, vector<1x64x32xbf16>
    %232 = vector.shape_cast %231 : vector<1x64x32xbf16> to vector<64x32xbf16>
    %cst_94 = arith.constant dense<0.000000e+00> : vector<8x32xf32>
    %233 = tpu.matmul %230, %232, %cst_94 {dimension_numbers = #tpu.dot_dimension_numbers<[1], [0], [0], [1], [0, 0, 1, 1], [], []>} : vector<8x64xbf16>, vector<64x32xbf16>, vector<8x32xf32> -> vector<8x32xf32>
    %c0_95 = arith.constant 0 : index
    %c0_96 = arith.constant 0 : index
    %c0_97 = arith.constant 0 : index
    %234 = vector.load %arg16[%c0_95, %c0_96, %c0_97] : memref<1x1x32xf32, #tpu.memory_space<vmem>>, vector<1x1x32xf32>
    %235 = vector.shape_cast %234 : vector<1x1x32xf32> to vector<1x32xf32>
    %236 = vector.broadcast %235 : vector<1x32xf32> to vector<8x32xf32>
    %237 = arith.addf %233, %236 : vector<8x32xf32>
    %238 = arith.addf %237, %152 : vector<8x32xf32>
    %239 = vector.shape_cast %238 : vector<8x32xf32> to vector<1x8x32xf32>
    %c0_98 = arith.constant 0 : index
    %c0_99 = arith.constant 0 : index
    %c0_100 = arith.constant 0 : index
    %240 = vector.load %arg18[%c0_98, %c0_99, %c0_100] : memref<1x8x32xf32, #tpu.memory_space<vmem>>, vector<1x8x32xf32>
    tpu.vector_store %arg18[%c0_98, %c0_99, %c0_100], %239 {strides = array<i32>} : memref<1x8x32xf32, #tpu.memory_space<vmem>>, vector<1x8x32xf32>,
    %c1_i32 = arith.constant 1 : i32
    %241 = arith.cmpi eq, %arg1, %c1_i32 : i32
    %242 = arith.extui %241 : i1 to i32
    %c0_i32_101 = arith.constant 0 : i32
    %243 = arith.cmpi ne, %242, %c0_i32_101 : i32
    scf.if %243 {
      %c0_102 = arith.constant 0 : index
      %c0_103 = arith.constant 0 : index
      %c0_104 = arith.constant 0 : index
      %244 = vector.load %arg17[%c0_102, %c0_103, %c0_104] : memref<1x8x32xf32, #tpu.memory_space<vmem>>, vector<1x8x32xf32>
      tpu.vector_store %arg17[%c0_102, %c0_103, %c0_104], %239 {strides = array<i32>} : memref<1x8x32xf32, #tpu.memory_space<vmem>>, vector<1x8x32xf32>,
    } else {
    }
    return
  }
  func.func @transform_0(%arg0: i32, %arg1: i32) -> (i32, i32, i32) {
    %c0_i32 = arith.constant 0 : i32
    %c0_i32_0 = arith.constant 0 : i32
    %c0_i32_1 = arith.constant 0 : i32
    return %arg0, %c0_i32, %c0_i32_0 : i32, i32, i32
  }
  func.func @transform_1(%arg0: i32, %arg1: i32) -> (i32, i32, i32) {
    %c0_i32 = arith.constant 0 : i32
    %c0_i32_0 = arith.constant 0 : i32
    %c0_i32_1 = arith.constant 0 : i32
    return %arg0, %c0_i32, %c0_i32_0 : i32, i32, i32
  }
  func.func @transform_2(%arg0: i32, %arg1: i32) -> (i32, i32, i32) {
    %c0_i32 = arith.constant 0 : i32
    %c0_i32_0 = arith.constant 0 : i32
    %c0_i32_1 = arith.constant 0 : i32
    return %arg1, %c0_i32, %c0_i32_0 : i32, i32, i32
  }
  func.func @transform_3(%arg0: i32, %arg1: i32) -> (i32, i32, i32) {
    %c0_i32 = arith.constant 0 : i32
    %c0_i32_0 = arith.constant 0 : i32
    %c0_i32_1 = arith.constant 0 : i32
    return %arg1, %c0_i32, %c0_i32_0 : i32, i32, i32
  }
  func.func @transform_4(%arg0: i32, %arg1: i32) -> (i32, i32, i32) {
    %c0_i32 = arith.constant 0 : i32
    %c0_i32_0 = arith.constant 0 : i32
    %c0_i32_1 = arith.constant 0 : i32
    return %arg1, %c0_i32, %c0_i32_0 : i32, i32, i32
  }
  func.func @transform_5(%arg0: i32, %arg1: i32) -> (i32, i32, i32) {
    %c0_i32 = arith.constant 0 : i32
    %c0_i32_0 = arith.constant 0 : i32
    %c0_i32_1 = arith.constant 0 : i32
    return %arg1, %c0_i32, %c0_i32_0 : i32, i32, i32
  }
  func.func @transform_6(%arg0: i32, %arg1: i32) -> (i32, i32, i32) {
    %c0_i32 = arith.constant 0 : i32
    %c0_i32_0 = arith.constant 0 : i32
    %c0_i32_1 = arith.constant 0 : i32
    return %arg1, %c0_i32, %c0_i32_0 : i32, i32, i32
  }
  func.func @transform_7(%arg0: i32, %arg1: i32) -> (i32, i32, i32) {
    %c0_i32 = arith.constant 0 : i32
    %c0_i32_0 = arith.constant 0 : i32
    %c0_i32_1 = arith.constant 0 : i32
    return %arg1, %c0_i32, %c0_i32_0 : i32, i32, i32
  }
  func.func @transform_8(%arg0: i32, %arg1: i32) -> (i32, i32, i32) {
    %c0_i32 = arith.constant 0 : i32
    %c0_i32_0 = arith.constant 0 : i32
    %c0_i32_1 = arith.constant 0 : i32
    return %arg1, %c0_i32, %c0_i32_0 : i32, i32, i32
  }
  func.func @transform_9(%arg0: i32, %arg1: i32) -> (i32, i32, i32) {
    %c0_i32 = arith.constant 0 : i32
    %c0_i32_0 = arith.constant 0 : i32
    %c0_i32_1 = arith.constant 0 : i32
    return %arg1, %c0_i32, %c0_i32_0 : i32, i32, i32
  }
  func.func @transform_10(%arg0: i32, %arg1: i32) -> (i32, i32, i32) {
    %c0_i32 = arith.constant 0 : i32
    %c0_i32_0 = arith.constant 0 : i32
    %c0_i32_1 = arith.constant 0 : i32
    return %arg1, %c0_i32, %c0_i32_0 : i32, i32, i32
  }
  func.func @transform_11(%arg0: i32, %arg1: i32) -> (i32, i32, i32) {
    %c0_i32 = arith.constant 0 : i32
    %c0_i32_0 = arith.constant 0 : i32
    %c0_i32_1 = arith.constant 0 : i32
    return %arg1, %c0_i32, %c0_i32_0 : i32, i32, i32
  }
  func.func @transform_12(%arg0: i32, %arg1: i32) -> (i32, i32, i32) {
    %c0_i32 = arith.constant 0 : i32
    %c0_i32_0 = arith.constant 0 : i32
    %c0_i32_1 = arith.constant 0 : i32
    return %arg1, %c0_i32, %c0_i32_0 : i32, i32, i32
  }
  func.func @transform_13(%arg0: i32, %arg1: i32) -> (i32, i32, i32) {
    %c0_i32 = arith.constant 0 : i32
    %c0_i32_0 = arith.constant 0 : i32
    %c0_i32_1 = arith.constant 0 : i32
    return %arg1, %c0_i32, %c0_i32_0 : i32, i32, i32
  }
  func.func @transform_14(%arg0: i32, %arg1: i32) -> (i32, i32, i32) {
    %c0_i32 = arith.constant 0 : i32
    %c0_i32_0 = arith.constant 0 : i32
    %c0_i32_1 = arith.constant 0 : i32
    return %arg1, %c0_i32, %c0_i32_0 : i32, i32, i32
  }
  func.func @transform_15(%arg0: i32, %arg1: i32) -> (i32, i32, i32) {
    %c0_i32 = arith.constant 0 : i32
    %c0_i32_0 = arith.constant 0 : i32
    %c0_i32_1 = arith.constant 0 : i32
    return %arg0, %c0_i32, %c0_i32_0 : i32, i32, i32
  }
}

</mosaic_0001>

<bundles_post_ra>
// kernel: tpu_custom_call.1
= control target key start
LH: loop header
LB: loop body
LE: loop exit
PB: predicated region body
PF: predicated region fallthrough
CT: control target
= control target key end

     0   :  { %s3336_s0 = inlined_call_operand.hbm [shape: f32[2,8,32], index: 0, kind: input, shape index: {}]   ;;  %s3337_s1 = inlined_call_operand.vmem [shape: f32[2,16,32], index: 1, kind: input, shape index: {}]   ;;  %s3338_s2 = inlined_call_operand.vmem [shape: f32[2,1,32], index: 2, kind: input, shape index: {}]   ;;  %s3339_s3 = inlined_call_operand.vmem [shape: f32[2,1,32], index: 3, kind: input, shape index: {}]   ;;  %s3340_s4 = inlined_call_operand.vmem [shape: bf16[2,32,32], index: 4, kind: input, shape index: {}]   ;;  %s3341_s5 = inlined_call_operand.vmem [shape: bf16[2,32,32], index: 5, kind: input, shape index: {}]   ;;  %s3342_s6 = inlined_call_operand.hbm [shape: bf16[2,32,32], index: 6, kind: input, shape index: {}]   ;;  %s3343_s7 = inlined_call_operand.hbm [shape: bf16[2,32,32], index: 7, kind: input, shape index: {}]   ;;  %s3344_s8 = inlined_call_operand.vmem [shape: f32[2,1,32], index: 8, kind: input, shape index: {}]   ;;  %s3345_s9 = inlined_call_operand.vmem [shape: f32[2,1,32], index: 9, kind: input, shape index: {}]   ;;  %s3346_s10 = inlined_call_operand.vmem [shape: f32[2,1,32], index: 10, kind: input, shape index: {}]   ;;  %s3347_s11 = inlined_call_operand.hbm [shape: bf16[2,32,64], index: 11, kind: input, shape index: {}]   ;;  %s3348_s12 = inlined_call_operand.vmem [shape: f32[2,1,64], index: 12, kind: input, shape index: {}]   ;;  %s3349_s13 = inlined_call_operand.vmem [shape: bf16[2,64,32], index: 13, kind: input, shape index: {}]   ;;  %s3350_s14 = inlined_call_operand.vmem [shape: f32[2,1,32], index: 14, kind: input, shape index: {}]   ;;  %s3351_s15 = inlined_call_operand.hbm [shape: f32[2,8,32], index: 15, kind: output, shape index: {}]  }
   0x1   :  { %3376 = sst [smem:[#allocation32_spill]] %s3336_s0 }
   0x2   :  { %3377 = sst [smem:[#allocation33_spill]] %s3337_s1 }
   0x3   :  { %3378 = sst [smem:[#allocation34_spill]] %s3338_s2 }
   0x4   :  { %3379 = sst [smem:[#allocation35_spill]] %s3339_s3 }
   0x5   :  { %3380 = sst [smem:[#allocation36_spill]] %s3340_s4 }
   0x6   :  { %3381 = sst [smem:[#allocation37_spill]] %s3341_s5 }
   0x7   :  { %3382 = sst [smem:[#allocation38_spill]] %s3342_s6 }
   0x8   :  { %3383 = sst [smem:[#allocation39_spill]] %s3343_s7 }
   0x9   :  { %3384 = sst [smem:[#allocation40_spill]] %s3344_s8 }
   0xa   :  { %3385 = sst [smem:[#allocation41_spill]] %s3345_s9 }
   0xb   :  { %3386 = sst [smem:[#allocation42_spill]] %s3346_s10 }
   0xc   :  { %3387 = sst [smem:[#allocation43_spill]] %s3347_s11 }
   0xd   :  { %3388 = sst [smem:[#allocation44_spill]] %s3348_s12 }
   0xe   :  { %3389 = sst [smem:[#allocation45_spill]] %s3349_s13 }
   0xf   :  { %3390 = sst [smem:[#allocation46_spill]] %s3350_s14 }
  0x10   :  { %3391 = sst [smem:[#allocation47_spill]] %s3351_s15 }
  0x11   :  { %20 = vsyncpa [#allocation5], 0 }
  0x12   :  { %22 = vsyncpa [#allocation5 + $0x1], 0 }
  0x13   :  { %23 = vsyncpa [#allocation8], 0 }
  0x14   :  { %25 = vsyncpa [#allocation8 + $0x1], 0 }
  0x15   :  { %26 = vsyncpa [#allocation11], 0 }
  0x16   :  { %28 = vsyncpa [#allocation11 + $0x1], 0 }
  0x17   :  { %29 = vsyncpa [#allocation6], 0 }
  0x18   :  { %31 = vsyncpa [#allocation6 + $0x1], 0  ;;  %s2796_s18 = smov 0   ;;  %s2798_s19 = smov 0  }
  0x19   :  { %s2800_s20 = smov 0   ;;  %s2802_s21 = smov 0  }
  0x1a   :  { %s2804_s22 = smov 0   ;;  %s2806_s23 = smov 0  }
  0x1b   :  { %s2808_s24 = smov 0   ;;  %s2810_s25 = smov 0  }
  0x1c   :  { %s2812_s26 = smov 0   ;;  %s2814_s27 = smov 0  }
  0x1d   :  { %s2816_s28 = smov 0  }
  0x1e LB: > { %3392 = sst [smem:[#allocation17_spill]] %s2662_s19  ;;  %s46_s29 = sadd.s32 1, %s2690_s26  ;;  %s2698_s28 = sphi %s2816_s28, %s37_s28   ;;  %s2694_s27 = sphi %s2814_s27, %s3472_s27   ;;  %s2690_s26 = sphi %s2812_s26, %s3471_s26   ;;  %s2686_s25 = sphi %s2810_s25, %s3470_s25   ;;  %s2682_s24 = sphi %s2808_s24, %s3469_s24   ;;  %s2678_s23 = sphi %s2806_s23, %s3468_s23   ;;  %s2674_s22 = sphi %s2804_s22, %s3467_s22   ;;  %s2670_s21 = sphi %s2802_s21, %s3466_s21   ;;  %s2666_s20 = sphi %s2800_s20, %s3465_s20   ;;  %s2662_s19 = sphi %s2798_s19, %s3464_s19   ;;  %s2658_s18 = sphi %s2796_s18, %s3463_s18  }
  0x1f   : > { %3393 = sst [smem:[#allocation18_spill]] %s2666_s20  ;;  %p64_p0 = scmp.eq.s32.totalorder %s2698_s28, 0 }
  0x20   : > { %3394 = sst [smem:[#allocation19_spill]] %s2670_s21  ;;  %p2853_p1 = scmp.ge.s32.totalorder %s46_s29, 2 }
  0x21   : > { %3395 = sst [smem:[#allocation20_spill]] %s2674_s22  ;;  %s212_s16 = sadd.s32 1, %s2666_s20 }
  0x22   : > { %3396 = sst [smem:[#allocation21_spill]] %s2678_s23  ;;  %p219_p2 = scmp.ne.s32.totalorder %s2666_s20, %s2662_s19 }
  0x23   : > { %3397 = sst [smem:[#allocation22_spill]] %s2682_s24  ;;  %s3474_s29 = smov (%p2853_p1, %s46_s29), 0 }
  0x24   : > { %3398 = sst [smem:[#allocation23_spill]] %s2686_s25  ;;  %p221_p3 = por %p219_p2, %p64_p0 }
  0x25   : > { %3399 = sst [smem:[#allocation24_spill]] %s2690_s26  ;;  %p3361_p4 = scmp.lt.s32.totalorder %s2698_s28, 4 }
  0x26   : > { %3400 = sst [smem:[#allocation25_spill]] %s2694_s27  ;;  %s209_s17 = ssub.s32 %s2690_s26, %s3474_s29 }
  0x27   : > { %3402 = sst [smem:[#allocation26_spill]] %s3474_s29  ;;  %s537_s15 = sand.u32 1, %s2698_s28  }
  0x28   : > { %p210_p5 = scmp.eq.s32.totalorder %s209_s17, 0  ;;  %s3354_s13 = sand.u32 1, %s2666_s20  }
  0x29   : > { %s2872_s14 = sshll.u32 %s2690_s26, 8  ;;  %s2879_s10 = sshll.u32 %s3354_s13, 4 }
  0x2a   : > { %s2875_s12 = scalar_select %p210_p5, %s2666_s20, %s212_s16  }
  0x2b   : > { %s3404_s6 = sld [smem:[#allocation38_spill]]  ;;  %p2887_p6 = pnand %p3361_p4, %p221_p3 }
  0x2c   : > { %3403 = sst [smem:[#allocation27_spill]] %s2875_s12  ;;  %s541_s17 = scalar_lea.vmem [#allocation7], %s2879_s10 }
  0x2d   : > { %s548_s29 = sshll.u32 %s541_s17, 4  ;;  %p2090_p7 = scmp.ge.s32.totalorder %s2698_s28, 1  ;;  %s549_s29 = int_to_ptr.vmem [resolvable:$true] %s548_s29 }
  0x2e   : > { %s2893_s16 = scalar_lea.sflag [#allocation8], %s537_s15  ;;  %p3358_p8 = pneg %p2887_p6 }
  0x2f   : > { %s2471_s13 = scalar_lea.vmem %s549_s29, 256  ;;  %s2700_s8 = smov [#allocation7]  }
  0x30   : > { %p2472_p9 = scmp.ne.s32.totalorder %s549_s29, %s2471_s13  ;;  %s2476_s9 = sshll.u32 %s2700_s8, 4  ;;  %s2477_s9 = int_to_ptr.vmem [resolvable:$false] %s2476_s9 }
  0x31   : > { %s547_s5 = scalar_lea.hbm %s3404_s6, %s2872_s14  ;;  %s2478_s6 = scalar_lea.vmem %s2477_s9, 512 }
  0x32   : > { %p2474_p10 = pnand %p2472_p9, %p3358_p8  ;;  %p2479_p12 = scmp.lt.s32.totalorder %s549_s29, %s2477_s9 }
  0x33   : > { %p2480_p13 = scmp.lt.s32.totalorder %s2478_s6, %s2471_s13 }
  0x34   : > { %p2475_p11 = pneg %p2474_p10 }
  0x35   : > { %p2481_p2 = por %p2480_p13, %p2479_p12 }
  0x37   : > { %p2482_p3 = pnand %p2481_p2, %p2475_p11 }
  0x39   : > { %2485 = shalt.err (!%p2482_p3)
}
  0x3a   : > { %s3356_s17 = smov 64   ;;  %s3359_s6 = smov 4  }
  0x3b   : > { %2304 = dma.hbm_to_vmem [thread:$0]  (!%p2887_p6), %s547_s5, 256, %s549_s29, %s2893_s16, %s3356_s17, %s3356_s17, %s3359_s6  }
  0x3c   : > { %p636_p5 = scmp.lt.s32.totalorder %s2698_s28, 5  ;;  %s2914_s15 = sadd.s32 4294967295, %s2698_s28  }
  0x3d   : > { %s2076_s8 = sadd.s32 4294967294, %s2698_s28   ;;  %s49_s9 = sadd.s32 1, %s2694_s27 }
  0x3e   : > { %p2909_p9 = pnand %p2090_p7, %p636_p5  ;;  %s56_s26 = sadd.s32 1, %s2678_s23 }
  0x3f   : > { %s3476_s9 = smov (!%p2853_p1, %s49_s9), %s2694_s27  ;;  %p63_p10 = scmp.ne.s32.totalorder %s2678_s23, %s2674_s22 }
  0x40   : > { %p69_p7 = scmp.ne.s32.totalorder %s2674_s22, %s2670_s21  ;;  %p51_p11 = scmp.ge.s32.totalorder %s3476_s9, 2 }
  0x41   : > { %p70_p12 = scmp.eq.s32.totalorder %s2914_s15, 0  ;;  %p2932_p13 = por %p64_p0, %p63_p10 }
  0x42   : > { %p225_p2 = scmp.ne.s32.totalorder %s2662_s19, %s2658_s18  ;;  %s3478_s9 = smov (%p51_p11, %s3476_s9), 0 }
  0x43   : > { %3408 = sst [smem:[#allocation28_spill]] %s3478_s9  ;;  %p2943_p1 = por %p70_p12, %p69_p7 }
  0x44   : > { %p2947_p3 = por %p225_p2, %p70_p12  ;;  %s53_s17 = ssub.s32 %s2694_s27, %s3478_s9 }
  0x45   : > { %p457_p0 = scmp.eq.s32.totalorder %s2914_s15, 3  ;;  %p54_p5 = scmp.eq.s32.totalorder %s53_s17, 0 }
  0x46   : > { %p463_p8 = scmp.eq.s32.totalorder %s2076_s8, 3  ;;  %s483_s6 = sand.u32 1, %s2678_s23  }
  0x47   : > { %p2957_p11 = por %p457_p0, %p63_p10  ;;  %s2079_s2 = sshll.u32 %s483_s6, 3 }
  0x48   : > { %s2963_s12 = scalar_select %p54_p5, %s2678_s23, %s56_s26  }
  0x49   : > { %s3411_s18 = scalar_select %p2957_p11, 1, 0 }
  0x4a   : > { %3413 = sst [smem:[#allocation30_spill]] %s2963_s12  ;;  %p2968_p4 = por %p463_p8, %p69_p7 }
  0x4b   : > { %3412 = sst [smem:[#allocation29_spill]] %s3411_s18  ;;  %s2080_s1 = sshll.u32 %s2694_s27, 7 }
  0x4c   : > { %s3414_s3 = scalar_select %p2968_p4, 1, 0 }
  0x4d   : > { %s3416_s0 = sld [smem:[#allocation32_spill]]  ;;  %s487_s8 = scalar_lea.vmem [#allocation4], %s2079_s2 }
  0x4e   : > { %3415 = sst [smem:[#allocation31_spill]] %s3414_s3  ;;  %s494_s25 = sshll.u32 %s487_s8, 4  ;;  %s495_s25 = int_to_ptr.vmem [resolvable:$true] %s494_s25 }
  0x4f   : > { %p3417_p10 = scmp.lt.s32.totalorder %s2698_s28, 4  ;;  %s3419_s7 = sld [smem:[#allocation39_spill]] }
  0x50   : > { %s484_s3 = scalar_lea.sflag [#allocation5], %s483_s6  ;;  %s2499_s27 = scalar_lea.vmem %s495_s25, 128 }
  0x51   : > { %p2980_p12 = pnand %p3417_p10, %p2932_p13  ;;  %p2500_p7 = scmp.ne.s32.totalorder %s495_s25, %s2499_s27 }
  0x53   : > { %s492_s17 = scalar_lea.hbm %s3416_s0, %s2080_s1  ;;  %p2488_p8 = pneg %p2980_p12 }
  0x54   : > { %s2703_s1 = smov [#allocation4]  }
  0x55   : > { %s568_s23 = scalar_lea.hbm %s3419_s7, %s2872_s14  ;;  %p2502_p2 = pnand %p2500_p7, %p2488_p8 }
  0x56   : > { %s2504_s2 = sshll.u32 %s2703_s1, 4  ;;  %s2505_s2 = int_to_ptr.vmem [resolvable:$false] %s2504_s2 }
  0x57   : > { %p2503_p0 = pneg %p2502_p2  ;;  %s2506_s24 = scalar_lea.vmem %s2505_s2, 256 }
  0x58   : > { %p2507_p13 = scmp.lt.s32.totalorder %s495_s25, %s2505_s2  ;;  %p2508_p5 = scmp.lt.s32.totalorder %s2506_s24, %s2499_s27 }
  0x5a   : > { %p2509_p10 = por %p2508_p5, %p2507_p13 }
  0x5c   : > { %p2510_p4 = pnand %p2509_p10, %p2503_p0 }
  0x5e   : > { %2513 = shalt.err (!%p2510_p4)
}
  0x5f   : > { %2301 = dma.hbm_to_vmem [thread:$0]  (!%p2980_p12), %s492_s17, 128, %s495_s25, %s484_s3  }
  0x60   : > { %s562_s12 = scalar_lea.vmem [#allocation9], %s2879_s10  ;;  %p3420_p7 = pneg %p2887_p6 }
  0x61   : > { %s569_s6 = sshll.u32 %s562_s12, 4  ;;  %s2704_s5 = smov [#allocation9]   ;;  %s570_s6 = int_to_ptr.vmem [resolvable:$true] %s569_s6 }
  0x62   : > { %s2527_s9 = scalar_lea.vmem %s570_s6, 256  ;;  %s2532_s8 = sshll.u32 %s2704_s5, 4  ;;  %s2533_s8 = int_to_ptr.vmem [resolvable:$false] %s2532_s8 }
  0x63   : > { %p2528_p8 = scmp.ne.s32.totalorder %s570_s6, %s2527_s9  ;;  %s2534_s27 = scalar_lea.vmem %s2533_s8, 512 }
  0x64   : > { %p2535_p0 = scmp.lt.s32.totalorder %s570_s6, %s2533_s8  ;;  %p2536_p4 = scmp.lt.s32.totalorder %s2534_s27, %s2527_s9 }
  0x65   : > { %p2530_p2 = pnand %p2528_p8, %p3420_p7 }
  0x66   : > { %p2537_p13 = por %p2536_p4, %p2535_p0 }
  0x67   : > { %p2531_p11 = pneg %p2530_p2 }
  0x69   : > { %p2538_p5 = pnand %p2537_p13, %p2531_p11 }
  0x6b   : > { %2541 = shalt.err (!%p2538_p5)
}
  0x6c   : > { %s3421_s3 = smov 4   ;;  %s3422_s25 = smov 64  }
  0x6d   : > { %2307 = dma.hbm_to_vmem [thread:$0]  (!%p2887_p6), %s568_s23, 256, %s570_s6, %s2893_s16, %s3422_s25, %s3422_s25, %s3421_s3  }
  0x6e   : > { %s3423_s11 = sld [smem:[#allocation43_spill]]  ;;  %s601_s24 = scalar_lea.vmem [#allocation10], %s2879_s10 }
  0x6f   : > { %s608_s12 = sshll.u32 %s601_s24, 4  ;;  %s3424_s9 = sand.u32 1, %s2666_s20   ;;  %s609_s12 = int_to_ptr.vmem [resolvable:$true] %s608_s12 }
  0x70   : > { %s598_s5 = scalar_lea.sflag [#allocation11], %s3424_s9  ;;  %s2555_s8 = scalar_lea.vmem %s609_s12, 256 }
  0x71   : > { %p2556_p11 = scmp.ne.s32.totalorder %s609_s12, %s2555_s8  ;;  %p3425_p12 = pmov %p3420_p7 }
  0x72   : > { %s2705_s27 = smov [#allocation10]  }
  0x73   : > { %p2558_p10 = pnand %p2556_p11, %p3425_p12  ;;  %s2560_s18 = sshll.u32 %s2705_s27, 4  ;;  %s2561_s18 = int_to_ptr.vmem [resolvable:$false] %s2560_s18 }
  0x74   : > { %s607_s2 = scalar_lea.hbm %s3423_s11, %s2872_s14  ;;  %s2562_s17 = scalar_lea.vmem %s2561_s18, 512 }
  0x75   : > { %p2559_p8 = pneg %p2558_p10  ;;  %p2563_p7 = scmp.lt.s32.totalorder %s609_s12, %s2561_s18 }
  0x76   : > { %p2564_p2 = scmp.lt.s32.totalorder %s2562_s17, %s2555_s8 }
  0x78   : > { %p2565_p0 = por %p2564_p2, %p2563_p7 }
  0x7a   : > { %p2566_p4 = pnand %p2565_p0, %p2559_p8 }
  0x7c   : > { %2569 = shalt.err (!%p2566_p4)
}
  0x7d   : > { %2310 = dma.hbm_to_vmem [thread:$0]  (!%p2887_p6), %s607_s2, 256, %s609_s12, %s598_s5, %s3422_s25, %s3422_s25, %s3421_s3  }
  0x7e   : > { %640 = sbr.rel (%p2909_p9) target bundleno = 2658 (0xa62), region = 80  ;;  %s3025_s10 = sand.u32 (!%p2909_p9), 1, %s2674_s22  }
  0x7f   : > { %s3371_s14 = sshll.u32 (!%p2909_p9), %s3025_s10, 3  ;;  %s643_s23 = scalar_lea.sflag (!%p2909_p9), [#allocation5], %s3025_s10 }
  0x80   : > { %s3031_s16 = scalar_lea.vmem (!%p2909_p9), [#allocation4], %s3371_s14 }
  0x83   : > { %2641 = dma.done.wait (%p2943_p1), %s643_s23, 128  }
  0x84   : > { %2643 = vsyncadd (%p2943_p1), %s643_s23, 4294967168  ;;  %s651_s4 = sand.u32 1, %s2914_s15   ;;  %s653_s13 = sand.u32 1, %s2662_s19  }
  0x85   : > { %s3039_s6 = sshll.u32 %s653_s13, 4  ;;  %s652_s3 = scalar_lea.sflag [#allocation8], %s651_s4 }
  0x86   : > { %2645 = dma.done.wait (%p2947_p3), %s652_s3, 512  }
  0x87   : > { %2647 = vsyncadd (%p2947_p3), %s652_s3, 4294966784  ;;  %s670_s26 = scalar_lea.sflag [#allocation11], %s653_s13 }
  0x88   : > { %2649 = dma.done.wait (%p2947_p3), %s670_s26, 256  }
  0x89   : > { %2651 = vsyncadd (%p2947_p3), %s670_s26, 4294967040  ;;  %s3426_s15 = sld [smem:[#allocation23_spill]]  ;;  %s3439_s27 = sshll.u32 %s3025_s10, 3 }
  0x8a   : > { %s3427_s2 = sld [smem:[#allocation22_spill]]  ;;  %s3108_s18 = scalar_lea.vmem [#allocation12], %s3439_s27 }
  0x8b   : > { %s3428_s5 = sld [smem:[#allocation33_spill]] }
  0x8c   : > { %s3431_s14 = sld [smem:[#allocation36_spill]] }
  0x8d   : > { %s3432_s11 = sld [smem:[#allocation37_spill]] }
  0x8e   : > { %s3433_s9 = sld [smem:[#allocation40_spill]] }
  0x8f   : > { %p776_p6 = scmp.lt.s32.totalorder %s3426_s15, 1  ;;  %s3434_s17 = sld [smem:[#allocation41_spill]] }
  0x90   : > { %p781_p9 = scmp.lt.s32.totalorder %s3427_s2, 1  ;;  %s3435_s26 = sld [smem:[#allocation42_spill]] }
  0x91   : > { %s3480_s15 = smov (!%p776_p6, %s3426_s15), 1  ;;  %s3436_s29 = sld [smem:[#allocation44_spill]] }
  0x92   : > { %s3056_s24 = scalar_select %p781_p9, %s3427_s2, 1 }
  0x93   : > { %s2148_s30 = sshll.u32 %s3480_s15, 4  ;;  %s3438_s12 = sld [smem:[#allocation45_spill]] }
  0x94   : > { %s780_s8 = scalar_lea.vmem %s3428_s5, %s2148_s30  ;;  %s2149_s1 = sshll.u32 %s3056_s24, 4 }
  0x95   : > { %s3073_s0 = scalar_lea.vmem %s3431_s14, %s2149_s1  ;;  %s3078_s22 = scalar_lea.vmem %s3432_s11, %s2149_s1 }
  0x96   : > { %s799_s5 = scalar_lea.vmem %s3433_s9, %s3056_s24  ;;  %s802_s4 = scalar_lea.vmem %s3434_s17, %s3056_s24 }
  0x97   : > { %s805_s23 = scalar_lea.vmem %s3435_s26, %s3056_s24  ;;  %s808_s20 = scalar_lea.vmem %s3436_s29, %s3056_s24 }
  0x98   : > { %s2151_s19 = sshll.u32 %s3056_s24, 5  ;;  %s3437_s1 = sld [smem:[#allocation46_spill]] }
  0x99   : > { %s3104_s9 = scalar_lea.vmem %s3438_s12, %s2151_s19  ;;  %p2104_p1 = scmp.ne.s32.totalorder %s3427_s2, 0 }
  0x9b   : > { %821 = sbr.rel (%p2104_p1) target bundleno = 163 (0xa3), region = 100 }
  0x9e   : > { %s816_s15 = scalar_lea.vmem %s3437_s1, %s3056_s24 }
  0xa0   : > { %v822_v0 = vld [vmem:[%s3031_s16] sm:$0xff]  ;;  %vm823_vm0 = vcmask 261120   ;;  %v826_v2 = vld [vmem:[%s780_s8 + $0x8] sm:$0xff] }
  0xa1   : > { %v825_v1 = vld [vmem:[%s780_s8] sm:$0xff]  ;;  %824 = vst.msk [vmem:[#allocation2] sm:$0xff] %vm823_vm0, %v822_v0  ;;  %828 = vst.msk [vmem:[#allocation3 + $0x8] sm:$0xff] %vm823_vm0, %v826_v2 }
  0xa2   : > { %827 = vst.msk [vmem:[#allocation3] sm:$0xff] %vm823_vm0, %v825_v1 }
  0xa3 PF: > { %vm834_vm1 = vcmask 261120   ;;  %v2416_v24 = vld [vmem:[%s3073_s0 + $0x8] sm:$0xff]   ;;  %v2706_v26 = vmov 0.0   ;;  %v2418_v27 = vld [vmem:[%s3073_s0] sm:$0xff]   ;;  %vm2707_vm2 = vmmov 0   ;;  %s3440_s21 = sld [smem:[#allocation34_spill]] }
  0xa4   : > { %v2417_v25 = vld [vmem:[%s3078_s22 + $0x8] sm:$0xff]   ;;  %2188 = vmatprep.subr.bf16.mxu0 %v2706_v26  ;;  %2196 = vmatprep.subr.bf16.mxu1 %v2706_v26  ;;  %v2419_v28 = vld [vmem:[%s3078_s22] sm:$0xff]   ;;  %s3442_s8 = sld [smem:[#allocation35_spill]]  ;;  %s3444_s17 = scalar_lea.vmem [#allocation7], %s3039_s6  ;;  %vm1075_vm3 = vcmask 64512   ;;  %vm1122_vm4 = vcmask 130048  }
  0xa5   : > { %2189 = vmatpush3.bf16.msra.mxu0 %v2416_v24  ;;  %2197 = vmatpush3.bf16.msra.mxu1 %v2417_v25  ;;  %v2420_v53 = vld [vmem:[%s3444_s17 + $0x8] sm:$0xff]   ;;  %s3445_s13 = smov %s3444_s17  ;;  %s2708_s3 = smov 120   ;;  %vm1519_vm5 = vcmask 195584   ;;  %vm1752_vm7 = vcmask 523264  }
  0xa6   : > { %2190 = vmatprep.subr.bf16.mxu0 %v2706_v26  ;;  %2198 = vmatprep.subr.bf16.mxu1 %v2706_v26  ;;  %v2421_v55 = vld [vmem:[%s3445_s13] sm:$0xff]   ;;  %s2709_s25 = smov 112   ;;  %s2710_s14 = smov 104  }
  0xa7   : > { %2192 = vmatprep.mubr.msk.bf16.mxu0 %vm2707_vm2, %v2706_v26  ;;  %2200 = vmatprep.mubr.msk.bf16.mxu1 %vm2707_vm2, %v2706_v26  ;;  %s3446_s29 = scalar_lea.vmem [#allocation9], %s3039_s6  ;;  %s2711_s7 = smov 8  }
  0xa8   : > { %v831_v4 = vld [vmem:[#allocation3 + $0x8] sm:$0xff]  ;;  %v3112_v5 = vld [vmem:[#allocation2] sm:$0xff]  ;;  %s2712_s11 = smov 16   ;;  %s3447_s1 = smov %s3446_s29 }
  0xa9   : > { %v830_v3 = vld [vmem:[#allocation3] sm:$0xff]  ;;  %v867_v7 = vsel %vm834_vm1, %v831_v4, 0.0  ;;  %v835_v8 = vsel %vm834_vm1, %v3112_v5, 0.0  ;;  %2191 = vmatpush3.bf16.msra.mxu0 %v2418_v27  ;;  %2199 = vmatpush3.bf16.msra.mxu1 %v2419_v28  ;;  %s3441_s22 = scalar_lea.vmem %s3440_s21, %s3056_s24  ;;  %s2713_s30 = smov 24  }
  0xaa   : > { %v864_v6 = vsel %vm834_vm1, %v830_v3, 0.0  ;;  %836 = vadd.xlane.f32.xlu1 %v835_v8  ;;  %2204 = vmatprep.subr.bf16.mxu0 %v2706_v26  ;;  %v2105_v40 = vld [vmem:[%s3441_s22] ss:$0 sm:$0xff]  ;;  %s3443_s26 = scalar_lea.vmem %s3442_s8, %s3056_s24  ;;  %s3455_s13 = sld [smem:[#allocation22_spill]] }
  0xab   : > { %865 = vadd.xlane.f32.xlu0 %v864_v6  ;;  %2212 = vmatprep.subr.bf16.mxu1 %v2706_v26  ;;  %v2106_v45 = vld [vmem:[%s3443_s26] ss:$0 sm:$0xff] }
  0xaf   : > { %868 = vadd.xlane.f32.xlu0 %v867_v7 }
  0xb0   : > { %p2140_p3 = scmp.ne.s32.totalorder %s3455_s13, 1 }
 0x133   : > { %v837_v10 = vpop.xlane.xlu1 %836 }
 0x134   : > { %v866_v9 = vpop.xlane.xlu0 %865  ;;  %v839_v12 = vmul.f32 0.03125, %v837_v10 }
 0x135   : > { %v870_v11 = vmul.f32 0.03125, %v866_v9 }
 0x136   : > { %v840_v14 = vsub.f32 %v3112_v5, %v839_v12 }
 0x137   : > { %v872_v13 = vsub.f32 %v830_v3, %v870_v11 }
 0x138   : > { %v869_v15 = vpop.xlane.xlu0 %868  ;;  %v841_v18 = vmul.f32 %v840_v14, %v840_v14 }
 0x139   : > { %v871_v16 = vmul.f32 0.03125, %v869_v15  ;;  %v874_v17 = vmul.f32 %v872_v13, %v872_v13 }
 0x13a   : > { %v842_v22 = vsel %vm834_vm1, %v841_v18, 0.0 }
 0x13b   : > { %v873_v19 = vsub.f32 %v831_v4, %v871_v16  ;;  %v876_v20 = vsel %vm834_vm1, %v874_v17, 0.0 }
 0x13c   : > { %877 = vadd.xlane.f32.xlu1 %v876_v20 }
 0x13d   : > { %v875_v21 = vmul.f32 %v873_v19, %v873_v19 }
 0x13f   : > { %v879_v23 = vsel %vm834_vm1, %v875_v21, 0.0 }
 0x140   : > { %880 = vadd.xlane.f32.xlu0 %v879_v23  ;;  %843 = vadd.xlane.f32.xlu1 %v842_v22 }
 0x1c5   : > { %v878_v29 = vpop.xlane.xlu1 %877 }
 0x1c6   : > { %v882_v30 = vmul.f32 0.03125, %v878_v29 }
 0x1c8   : > { %v884_v31 = vadd.f32 1e-05, %v882_v30 }
 0x1c9   : > { %v881_v32 = vpop.xlane.xlu0 %880  ;;  %v844_v33 = vpop.xlane.xlu1 %843 }
 0x1ca   : > { %2430 = vrsqrt.f32 %v884_v31  ;;  %v883_v34 = vmul.f32 0.03125, %v881_v32  ;;  %v845_v35 = vmul.f32 0.03125, %v844_v33 }
 0x1cc   : > { %v885_v36 = vadd.f32 1e-05, %v883_v34  ;;  %v846_v37 = vadd.f32 1e-05, %v845_v35 }
 0x1ce   : > { %2432 = vrsqrt.f32 %v885_v36 }
 0x1cf   : > { %2434 = vrsqrt.f32 %v846_v37 }
 0x1d7   : > { %v2431_v38 = vpop.eup %2430 }
 0x1d8   : > { %v888_v39 = vmul.f32 %v2431_v38, %v872_v13 }
 0x1da   : > { %v890_v44 = vmul.f32 %v2105_v40, %v888_v39 }
 0x1db   : > { %v2433_v41 = vpop.eup %2432 }
 0x1dc   : > { %v2435_v42 = vpop.eup %2434  ;;  %v889_v43 = vmul.f32 %v2433_v41, %v873_v19  ;;  %v892_v49 = vadd.f32 %v2106_v45, %v890_v44 }
 0x1dd   : > { %v848_v46 = vmul.f32 %v2435_v42, %v840_v14 }
 0x1de   : > { %v891_v47 = vmul.f32 %v2105_v40, %v889_v43 }
 0x1df   : > { %v855_v48 = vmul.f32 %v2105_v40, %v848_v46 }
 0x1e0   : > { %v893_v50 = vadd.f32 %v2106_v45, %v891_v47 }
 0x1e1   : > { %v862_v51 = vadd.f32 %v2106_v45, %v855_v48 }
 0x1e2   : > { %v894_v52 = vpack.c.bf16 %v893_v50, %v892_v49 }
 0x1e3   : > { %v863_v54 = vpack.c.bf16 %v862_v51, %v862_v51 }
 0x1e4   : > { %2201 = vmatmul.mubr.msk.bf16.vlgmr.msra.gmra.mxu1 %vm834_vm1, %v894_v52 }
 0x1e5   : > { %2193 = vmatmul.mubr.msk.bf16.vlgmr.msra.gmra.mxu0 %vm834_vm1, %v863_v54  ;;  %2214 = vmatprep.mubr.msk.bf16.mxu1 %vm2707_vm2, %v2706_v26 }
 0x1e6   : > { %2205 = vmatpush3.bf16.msra.mxu0 %v2420_v53  ;;  %2208 = vmatprep.mubr.msk.bf16.mxu0 %vm2707_vm2, %v2706_v26 }
 0x1e7   : > { %2206 = vmatprep.subr.bf16.mxu0 %v2706_v26 }
 0x1ea   : > { %2207 = vmatpush3.bf16.msra.mxu0 %v2421_v55 }
 0x1eb   : > { %2218 = vmatprep.subr.bf16.mxu0 %v2706_v26 }
 0x1ed   : > { %2209 = vmatmul.mubr.msk.bf16.vlgmr.msra.gmra.mxu0 %vm834_vm1, %v894_v52 }
 0x1ee   : > { %2220 = vmatprep.mubr.msk.bf16.mxu0 %vm2707_vm2, %v2706_v26 }
 0x2a4   : > { %v1008_v56 = vpop.f32.mrf.mxu1 }
 0x2a5   : > { %v948_v57 = vpop.f32.mrf.mxu0 }
 0x2a6   : > { %v954_v58 = vmul.f32 0.17677669, %v948_v57  ;;  %v2202_v59 = vpop.f32.mrf.mxu1 }
 0x2a7   : > { %v2194_v60 = vpop.f32.mrf.mxu0 }
 0x2a8   : > { %v1072_v61 = vpack.c.bf16 %v954_v58, %v954_v58  ;;  %v1011_v62 = vpop.f32.mrf.mxu1 }
 0x2a9   : > { %v951_v63 = vpop.f32.mrf.mxu0  ;;  %v1073_v0 = vpack.c.bf16 %v1011_v62, %v1008_v56 }
 0x2aa   : > { %1179 = vrot.lane.b32.xlu1 %v1072_v61, %s2708_s3  ;;  %v2203_v1 = vpop.f32.mrf.mxu1 }
 0x2ab   : > { %v2195_v2 = vpop.f32.mrf.mxu0  ;;  %1182 = vrot.lane.b32.xlu0 %v1073_v0, %s2708_s3  ;;  %v1080_v3 = vsel %vm1075_vm3, %v1073_v0, 0 }
 0x2ac   : > { %2213 = vmatpush3.bf16.xpose.msra.mxu1 %v1080_v3 }
 0x2ad   : > { %v1065_v4 = vpop.f32.mrf.mxu0  ;;  %2224 = vmatprep.subr.bf16.mxu1 %v2706_v26 }
 0x2ae   : > { %1291 = vrot.lane.b32.xlu1 %v1073_v0, %s2709_s25 }
 0x2af   : > { %v2210_v6 = vpop.f32.mrf.mxu0  ;;  %1399 = vrot.lane.b32.xlu0 %v1073_v0, %s2710_s14 }
 0x2b1   : > { %v1068_v7 = vpop.f32.mrf.mxu0 }
 0x2b2   : > { %v3167_v8 = vpack.c.bf16 %v1068_v7, %v1065_v4  ;;  %1289 = vrot.lane.b32.xlu1 %v1072_v61, %s2709_s25 }
 0x2b3   : > { %v2211_v9 = vpop.f32.mrf.mxu0  ;;  %2215 = vmatmul.mubr.msk.bf16.vlgmr.msra.gmra.mxu1 %vm1075_vm3, %v1072_v61 }
 0x2b4   : > { %2219 = vmatpush3.bf16.msra.mxu0 %v3167_v8  ;;  %2226 = vmatprep.mubr.msk.bf16.mxu1 %vm2707_vm2, %v2706_v26 }
 0x2b5   : > { %2230 = vmatprep.subr.bf16.mxu0 %v2706_v26 }
 0x2b6   : > { %1397 = vrot.lane.b32.xlu1 %v1072_v61, %s2710_s14 }
 0x31c   : > { %v1180_v10 = vpop.permute.xlu1 %1179 }
 0x31d   : > { %v1183_v11 = vpop.permute.xlu0 %1182 }
 0x31e   : > { %v1188_v12 = vsel %vm1075_vm3, %v1183_v11, 0 }
 0x31f   : > { %2225 = vmatpush3.bf16.xpose.msra.mxu1 %v1188_v12 }
 0x320   : > { %2236 = vmatprep.subr.bf16.mxu1 %v2706_v26  ;;  %v1292_v13 = vpop.permute.xlu1 %1291 }
 0x321   : > { %v1297_v14 = vsel %vm1075_vm3, %v1292_v13, 0  ;;  %v1400_v15 = vpop.permute.xlu0 %1399 }
 0x322   : > { %v1405_v17 = vsel %vm1075_vm3, %v1400_v15, 0 }
 0x324   : > { %v1290_v16 = vpop.permute.xlu1 %1289 }
 0x326   : > { %2227 = vmatmul.mubr.msk.bf16.vlgmr.msra.gmra.mxu1 %vm1075_vm3, %v1180_v10 }
 0x327   : > { %2237 = vmatpush3.bf16.xpose.msra.mxu1 %v1297_v14  ;;  %2238 = vmatprep.mubr.msk.bf16.mxu1 %vm2707_vm2, %v2706_v26 }
 0x328   : > { %2248 = vmatprep.subr.bf16.mxu1 %v2706_v26  ;;  %v1398_v18 = vpop.permute.xlu1 %1397 }
 0x32e   : > { %2239 = vmatmul.mubr.msk.bf16.vlgmr.msra.gmra.mxu1 %vm1075_vm3, %v1290_v16 }
 0x32f   : > { %2249 = vmatpush3.bf16.xpose.msra.mxu1 %v1405_v17  ;;  %2250 = vmatprep.mubr.msk.bf16.mxu1 %vm2707_vm2, %v2706_v26 }
 0x330   : > { %2260 = vmatprep.subr.bf16.mxu1 %v2706_v26 }
 0x336   : > { %2251 = vmatmul.mubr.msk.bf16.vlgmr.msra.gmra.mxu1 %vm1075_vm3, %v1398_v18 }
 0x337   : > { %2264 = vmatprep.mubr.msk.bf16.mxu1 %vm2707_vm2, %v2706_v26 }
 0x373   : > { %v1116_v19 = vpop.f32.mrf.mxu1 }
 0x374   : > { %v1123_v20 = vsel %vm1122_vm4, %v1116_v19, -inf }
 0x375   : > { %1124 = vmax.xlane.f32.xlu0 %v1123_v20  ;;  %v2216_v21 = vpop.f32.mrf.mxu1  ;;  %v2422_v20 = vld [vmem:[%s3446_s29 + $0x8] sm:$0xff]  }
 0x376   : > { %2261 = vmatpush3.bf16.msra.mxu1 %v2422_v20 }
 0x377   : > { %v1119_v22 = vpop.f32.mrf.mxu1  ;;  %2262 = vmatprep.subr.bf16.mxu1 %v2706_v26 }
 0x379   : > { %v2217_v23 = vpop.f32.mrf.mxu1 }
 0x3e6   : > { %v1224_v24 = vpop.f32.mrf.mxu1 }
 0x3e7   : > { %v1230_v25 = vsel %vm1122_vm4, %v1224_v24, -inf }
 0x3e8   : > { %1231 = vmax.xlane.f32.xlu1 %v1230_v25  ;;  %v2228_v27 = vpop.f32.mrf.mxu1 }
 0x3ea   : > { %v1227_v28 = vpop.f32.mrf.mxu1 }
 0x3ec   : > { %v2229_v29 = vpop.f32.mrf.mxu1 }
 0x3ee   : > { %v1333_v30 = vpop.f32.mrf.mxu1 }
 0x3ef   : > { %v1339_v31 = vsel %vm1122_vm4, %v1333_v30, -inf }
 0x3f0   : > { %1340 = vmax.xlane.f32.xlu0 %v1339_v31  ;;  %v2240_v32 = vpop.f32.mrf.mxu1 }
 0x3f2   : > { %v1336_v33 = vpop.f32.mrf.mxu1 }
 0x3f4   : > { %v2241_v34 = vpop.f32.mrf.mxu1 }
 0x3f6   : > { %v1441_v35 = vpop.f32.mrf.mxu1 }
 0x3f7   : > { %v1447_v36 = vsel %vm1122_vm4, %v1441_v35, -inf }
 0x3f8   : > { %1448 = vmax.xlane.f32.xlu0 %v1447_v36  ;;  %v2252_v37 = vpop.f32.mrf.mxu1 }
 0x3fa   : > { %v1444_v38 = vpop.f32.mrf.mxu1 }
 0x3fc   : > { %v2253_v39 = vpop.f32.mrf.mxu1 }
 0x3fe   : > { %v1125_v40 = vpop.xlane.xlu0 %1124 }
 0x3ff   : > { %v1126_v41 = vsub.f32 %v1116_v19, %v1125_v40 }
 0x401   : > { %v1127_v42 = vmul.f32 1.442695, %v1126_v41 }
 0x403   : > { %2436 = vpow2.f32 %v1127_v42  ;;  %v2124_v42 = vld [vmem:[%s799_s5] ss:$0 sm:$0xff]  ;;  %s3449_s5 = scalar_lea.vmem [#allocation10], %s3039_s6 }
 0x404   : > { %s3450_s19 = smov %s3449_s5 }
 0x410   : > { %v2437_v43 = vpop.eup %2436 }
 0x411   : > { %v1129_v44 = vsel %vm1122_vm4, %v2437_v43, 0.0 }
 0x412   : > { %1130 = vadd.xlane.f32.xlu0 %v1129_v44 }
 0x471   : > { %v1232_v45 = vpop.xlane.xlu1 %1231 }
 0x472   : > { %v1233_v46 = vsub.f32 %v1224_v24, %v1232_v45 }
 0x474   : > { %v1234_v47 = vmul.f32 1.442695, %v1233_v46 }
 0x476   : > { %2438 = vpow2.f32 %v1234_v47 }
 0x479   : > { %v1341_v48 = vpop.xlane.xlu0 %1340 }
 0x47a   : > { %v1342_v49 = vsub.f32 %v1333_v30, %v1341_v48  ;;  %v2423_v30 = vld [vmem:[%s3447_s1] sm:$0xff]  }
 0x47b   : > { %2263 = vmatpush3.bf16.msra.mxu1 %v2423_v30 }
 0x47c   : > { %v1343_v50 = vmul.f32 1.442695, %v1342_v49  ;;  %2276 = vmatprep.subr.bf16.mxu1 %v2706_v26 }
 0x47e   : > { %2440 = vpow2.f32 %v1343_v50 }
 0x481   : > { %v1449_v55 = vpop.xlane.xlu0 %1448 }
 0x482   : > { %v1450_v57 = vsub.f32 %v1441_v35, %v1449_v55  ;;  %v2424_v55 = vld [vmem:[%s3449_s5 + $0x8] sm:$0xff]  }
 0x483   : > { %v2439_v51 = vpop.eup %2438 }
 0x484   : > { %v1236_v52 = vsel %vm1122_vm4, %v2439_v51, 0.0  ;;  %v1451_v58 = vmul.f32 1.442695, %v1450_v57 }
 0x485   : > { %1237 = vadd.xlane.f32.xlu1 %v1236_v52 }
 0x48b   : > { %v2441_v53 = vpop.eup %2440 }
 0x48c   : > { %v1345_v54 = vsel %vm1122_vm4, %v2441_v53, 0.0 }
 0x48d   : > { %1346 = vadd.xlane.f32.xlu0 %v1345_v54 }
 0x496   : > { %1351 = vrot.lane.b32.xlu1 %v3167_v8, %s2709_s25 }
 0x49b   : > { %v1131_v56 = vpop.xlane.xlu0 %1130 }
 0x49c   : > { %2442 = vrcp.f32 %v1131_v56 }
 0x49d   : > { %2444 = vpow2.f32 %v1451_v58 }
 0x4a3   : > { %1243 = vrot.lane.b32.xlu0 %v3167_v8, %s2708_s3 }
 0x4a9   : > { %v2443_v59 = vpop.eup %2442 }
 0x4aa   : > { %v1133_v60 = vmul.f32 %v2443_v59, %v2437_v43  ;;  %v2445_v62 = vpop.eup %2444 }
 0x4ab   : > { %v1453_v63 = vsel %vm1122_vm4, %v2445_v62, 0.0 }
 0x4ac   : > { %v1134_v61 = vpack.c.bf16 %v1133_v60, %v1133_v60  ;;  %v2128_v60 = vld [vmem:[%s802_s4] ss:$0 sm:$0xff] }
 0x4ae   : > { %2221 = vmatmul.mubr.msk.bf16.vlgmr.msra.gmra.mxu0 %vm1122_vm4, %v1134_v61 }
 0x4af   : > { %2232 = vmatprep.mubr.msk.bf16.mxu0 %vm2707_vm2, %v2706_v26 }
 0x4ba   : > { %1454 = vadd.xlane.f32.xlu1 %v1453_v63 }
 0x4cb   : > { %1459 = vrot.lane.b32.xlu1 %v3167_v8, %s2710_s14 }
 0x50e   : > { %v1238_v0 = vpop.xlane.xlu1 %1237 }
 0x50f   : > { %2446 = vrcp.f32 %v1238_v0 }
 0x512   : > { %v1352_v7 = vpop.permute.xlu1 %1351 }
 0x516   : > { %v1347_v1 = vpop.xlane.xlu0 %1346 }
 0x517   : > { %2448 = vrcp.f32 %v1347_v1 }
 0x51a   : > { %v1244_v2 = vpop.permute.xlu0 %1243 }
 0x51b   : > { %2231 = vmatpush3.bf16.msra.mxu0 %v1244_v2  ;;  %v2426_v2 = vld [vmem:[%s3104_s9 + $0x18] sm:$0xff]  }
 0x51c   : > { %v2447_v3 = vpop.eup %2446  ;;  %2242 = vmatprep.subr.bf16.mxu0 %v2706_v26 }
 0x51d   : > { %v1240_v4 = vmul.f32 %v2447_v3, %v2439_v51  ;;  %v2427_v3 = vld [vmem:[%s3104_s9 + $0x10] sm:$0xff]  }
 0x51f   : > { %v1241_v6 = vpack.c.bf16 %v1240_v4, %v1240_v4  ;;  %v2428_v4 = vld [vmem:[%s3104_s9 + $0x8] sm:$0xff]  }
 0x521   : > { %2233 = vmatmul.mubr.msk.bf16.vlgmr.msra.gmra.mxu0 %vm1122_vm4, %v1241_v6  ;;  %v2429_v6 = vld [vmem:[%s3104_s9] sm:$0xff]  }
 0x522   : > { %2243 = vmatpush3.bf16.msra.mxu0 %v1352_v7  ;;  %2244 = vmatprep.mubr.msk.bf16.mxu0 %vm2707_vm2, %v2706_v26  ;;  %v2130_v7 = vld [vmem:[%s808_s20] ss:$0 sm:$0xff] }
 0x523   : > { %2254 = vmatprep.subr.bf16.mxu0 %v2706_v26 }
 0x524   : > { %v2449_v8 = vpop.eup %2448 }
 0x525   : > { %v1349_v9 = vmul.f32 %v2449_v8, %v2441_v53 }
 0x527   : > { %v1350_v10 = vpack.c.bf16 %v1349_v9, %v1349_v9 }
 0x529   : > { %2245 = vmatmul.mubr.msk.bf16.vlgmr.msra.gmra.mxu0 %vm1122_vm4, %v1350_v10 }
 0x52a   : > { %2256 = vmatprep.mubr.msk.bf16.mxu0 %vm2707_vm2, %v2706_v26 }
 0x543   : > { %v1455_v11 = vpop.xlane.xlu1 %1454 }
 0x544   : > { %2450 = vrcp.f32 %v1455_v11 }
 0x547   : > { %v1460_v12 = vpop.permute.xlu1 %1459 }
 0x548   : > { %2255 = vmatpush3.bf16.msra.mxu0 %v1460_v12 }
 0x549   : > { %2268 = vmatprep.subr.bf16.mxu0 %v2706_v26 }
 0x551   : > { %v2451_v13 = vpop.eup %2450 }
 0x552   : > { %v1457_v14 = vmul.f32 %v2451_v13, %v2445_v62  ;;  %v2129_v62 = vld [vmem:[%s805_s23] ss:$0 sm:$0xff] }
 0x554   : > { %v1458_v15 = vpack.c.bf16 %v1457_v14, %v1457_v14 }
 0x556   : > { %2257 = vmatmul.mubr.msk.bf16.vlgmr.msra.gmra.mxu0 %vm1122_vm4, %v1458_v15 }
 0x557   : > { %2272 = vmatprep.mubr.msk.bf16.mxu0 %vm2707_vm2, %v2706_v26  ;;  %2269 = vmatpush3.bf16.msra.mxu0 %v2424_v55 }
 0x558   : > { %2270 = vmatprep.subr.bf16.mxu0 %v2706_v26 }
 0x56e   : > { %v1172_v16 = vpop.f32.mrf.mxu0 }
 0x570   : > { %v2222_v17 = vpop.f32.mrf.mxu0 }
 0x572   : > { %v1175_v18 = vpop.f32.mrf.mxu0 }
 0x574   : > { %v2223_v19 = vpop.f32.mrf.mxu0 }
 0x5e1   : > { %v1283_v21 = vpop.f32.mrf.mxu0 }
 0x5e2   : > { %1506 = vrot.lane.b32.xlu1 %v1283_v21, %s2711_s7 }
 0x5e3   : > { %v2234_v22 = vpop.f32.mrf.mxu0 }
 0x5e5   : > { %v1286_v23 = vpop.f32.mrf.mxu0 }
 0x5e7   : > { %v2235_v24 = vpop.f32.mrf.mxu0 }
 0x5e9   : > { %v1391_v25 = vpop.f32.mrf.mxu0 }
 0x5ea   : > { %1510 = vrot.lane.b32.xlu0 %v1391_v25, %s2712_s11 }
 0x5eb   : > { %v2246_v27 = vpop.f32.mrf.mxu0 }
 0x5ed   : > { %v1394_v28 = vpop.f32.mrf.mxu0 }
 0x5ef   : > { %v2247_v29 = vpop.f32.mrf.mxu0 }
 0x616   : > { %v1499_v31 = vpop.f32.mrf.mxu0 }
 0x617   : > { %1514 = vrot.lane.b32.xlu1 %v1499_v31, %s2713_s30 }
 0x618   : > { %v2258_v32 = vpop.f32.mrf.mxu0 }
 0x61a   : > { %v1502_v33 = vpop.f32.mrf.mxu0 }
 0x61b   : > { %v2714_v33 = vmov -1.0  }
 0x61c   : > { %v2259_v34 = vpop.f32.mrf.mxu0 }
 0x654   : > { %v1507_v35 = vpop.permute.xlu1 %1506 }
 0x655   : > { %v1517_v37 = vsel %vm1075_vm3, %v1172_v16, %v1507_v35 }
 0x65c   : > { %v1511_v36 = vpop.permute.xlu0 %1510 }
 0x65d   : > { %v1518_v38 = vsel %vm1122_vm4, %v1517_v37, %v1511_v36 }
 0x689   : > { %v1515_v39 = vpop.permute.xlu1 %1514 }
 0x68a   : > { %v1520_v40 = vsel %vm1519_vm5, %v1518_v38, %v1515_v39 }
 0x68b   : > { %v1521_v41 = vpack.c.bf16 %v1520_v40, %v1520_v40  ;;  %v2134_v40 = vld [vmem:[%s816_s15] ss:$0 sm:$0xff] }
 0x68d   : > { %2265 = vmatmul.mubr.msk.bf16.vlgmr.msra.gmra.mxu1 %vm834_vm1, %v1521_v41 }
 0x68e   : > { %2284 = vmatprep.mubr.msk.bf16.mxu1 %vm2707_vm2, %v2706_v26  ;;  %2277 = vmatpush3.bf16.msra.mxu1 %v2426_v2 }
 0x68f   : > { %2278 = vmatprep.subr.bf16.mxu1 %v2706_v26 }
 0x692   : > { %2279 = vmatpush3.bf16.msra.mxu1 %v2427_v3 }
 0x693   : > { %2280 = vmatprep.subr.bf16.mxu1 %v2706_v26 }
 0x696   : > { %2281 = vmatpush3.bf16.msra.mxu1 %v2428_v4 }
 0x697   : > { %2282 = vmatprep.subr.bf16.mxu1 %v2706_v26 }
 0x69a   : > { %2283 = vmatpush3.bf16.msra.mxu1 %v2429_v6 }
 0x74d   : > { %v1582_v43 = vpop.f32.mrf.mxu1 }
 0x74e   : > { %v1583_v44 = vadd.f32 %v2124_v42, %v1582_v43 }
 0x74f   : > { %v2266_v45 = vpop.f32.mrf.mxu1 }
 0x750   : > { %v3237_v46 = vadd.f32 %v1583_v44, %v3112_v5  ;;  %v2425_v5 = vld [vmem:[%s3450_s19] sm:$0xff]  }
 0x751   : > { %v1585_v47 = vpop.f32.mrf.mxu1  ;;  %2271 = vmatpush3.bf16.msra.mxu0 %v2425_v5 }
 0x752   : > { %v1591_v48 = vsel %vm834_vm1, %v3237_v46, 0.0 }
 0x753   : > { %1592 = vadd.xlane.f32.xlu0 %v1591_v48  ;;  %v2267_v49 = vpop.f32.mrf.mxu1 }
 0x7dc   : > { %v1593_v50 = vpop.xlane.xlu0 %1592 }
 0x7dd   : > { %v1594_v51 = vmul.f32 0.03125, %v1593_v50 }
 0x7df   : > { %v1595_v52 = vsub.f32 %v3237_v46, %v1594_v51 }
 0x7e1   : > { %v1596_v53 = vmul.f32 %v1595_v52, %v1595_v52 }
 0x7e3   : > { %v1597_v54 = vsel %vm834_vm1, %v1596_v53, 0.0 }
 0x7e4   : > { %1598 = vadd.xlane.f32.xlu1 %v1597_v54 }
 0x86d   : > { %v1599_v56 = vpop.xlane.xlu1 %1598 }
 0x86e   : > { %v1600_v57 = vmul.f32 0.03125, %v1599_v56 }
 0x870   : > { %v1601_v58 = vadd.f32 1e-05, %v1600_v57 }
 0x872   : > { %2452 = vrsqrt.f32 %v1601_v58 }
 0x87f   : > { %v2453_v59 = vpop.eup %2452 }
 0x880   : > { %v1603_v61 = vmul.f32 %v2453_v59, %v1595_v52 }
 0x882   : > { %v1610_v63 = vmul.f32 %v2128_v60, %v1603_v61 }
 0x884   : > { %v1617_v0 = vadd.f32 %v2129_v62, %v1610_v63 }
 0x886   : > { %v1618_v1 = vpack.c.bf16 %v1617_v0, %v1617_v0 }
 0x888   : > { %2273 = vmatmul.mubr.msk.bf16.vlgmr.msra.gmra.mxu0 %vm834_vm1, %v1618_v1 }
 0x948   : > { %v1679_v8 = vpop.f32.mrf.mxu0 }
 0x949   : > { %v1680_v9 = vadd.f32 %v2130_v7, %v1679_v8 }
 0x94a   : > { %v2274_v10 = vpop.f32.mrf.mxu0 }
 0x94b   : > { %v1686_v11 = vmul.f32 0.70710677, %v1680_v9  ;;  %v1685_v36 = vmul.f32 0.5, %v1680_v9 }
 0x94c   : > { %v1682_v12 = vpop.f32.mrf.mxu0 }
 0x94d   : > { %v1689_v13 = vand.u32 2147483647, %v1686_v11  ;;  %vm1687_vm6 = vcmp.ge.f32.partialorder %v1686_v11, 0.0 }
 0x94e   : > { %v2275_v14 = vpop.f32.mrf.mxu0  ;;  %v1688_v34 = vsel %vm1687_vm6, 1.0, %v2714_v33 }
 0x94f   : > { %v1690_v15 = vmul.f32 0.3275911, %v1689_v13  ;;  %v1703_v17 = vsub.f32 0.0, %v1689_v13 }
 0x951   : > { %v1691_v16 = vadd.f32 1.0, %v1690_v15  ;;  %v1704_v18 = vmul.f32 %v1703_v17, %v1689_v13 }
 0x953   : > { %2454 = vrcp.f32 %v1691_v16  ;;  %v1705_v20 = vmul.f32 1.442695, %v1704_v18 }
 0x955   : > { %2456 = vpow2.f32 %v1705_v20 }
 0x960   : > { %v2455_v26 = vpop.eup %2454 }
 0x961   : > { %v1694_v19 = vmul.f32 1.0614054, %v2455_v26 }
 0x962   : > { %v2457_v30 = vpop.eup %2456 }
 0x963   : > { %v1695_v21 = vadd.f32 -1.4531521, %v1694_v19 }
 0x965   : > { %v1696_v22 = vmul.f32 %v2455_v26, %v1695_v21 }
 0x967   : > { %v1697_v23 = vadd.f32 1.4214138, %v1696_v22 }
 0x969   : > { %v1698_v24 = vmul.f32 %v2455_v26, %v1697_v23 }
 0x96b   : > { %v1699_v25 = vadd.f32 -0.28449672, %v1698_v24 }
 0x96d   : > { %v1700_v27 = vmul.f32 %v2455_v26, %v1699_v25 }
 0x96f   : > { %v1701_v28 = vadd.f32 0.2548296, %v1700_v27 }
 0x971   : > { %v1702_v29 = vmul.f32 %v2455_v26, %v1701_v28 }
 0x973   : > { %v1707_v31 = vmul.f32 %v2457_v30, %v1702_v29 }
 0x975   : > { %v1708_v32 = vsub.f32 1.0, %v1707_v31 }
 0x977   : > { %v1709_v35 = vmul.f32 %v1708_v32, %v1688_v34 }
 0x979   : > { %v1710_v37 = vadd.f32 1.0, %v1709_v35 }
 0x97b   : > { %v1711_v38 = vmul.f32 %v1710_v37, %v1685_v36 }
 0x97d   : > { %v1712_v39 = vpack.c.bf16 %v1711_v38, %v1711_v38 }
 0x97f   : > { %2285 = vmatmul.mubr.msk.bf16.vlgmr.msra.gmra.mxu1 %vm1752_vm7, %v1712_v39 }
 0xa3f   : > { %v1790_v41 = vpop.f32.mrf.mxu1 }
 0xa40   : > { %v1791_v42 = vadd.f32 %v2134_v40, %v1790_v41 }
 0xa41   : > { %v2286_v43 = vpop.f32.mrf.mxu1  ;;  %1801 = sbr.rel (%p2140_p3) target bundleno = 2631 (0xa47), region = 104 }
 0xa42   : > { %v1796_v44 = vadd.f32 %v1791_v42, %v3237_v46 }
 0xa43   : > { %v1793_v45 = vpop.f32.mrf.mxu1 }
 0xa44   : > { %1797 = vst.msk [vmem:[#allocation2] sm:$0xff] %vm834_vm1, %v1796_v44 }
 0xa45   : > { %v2287_v47 = vpop.f32.mrf.mxu1 }
 0xa46   : > { %1802 = vst.msk [vmem:[%s3108_s18] sm:$0xff] %vm834_vm1, %v1796_v44 }
 0xa47 PF: > { %s3456_s3 = sld [smem:[#allocation23_spill]]  ;;  %s1817_s11 = sshll.u32 %s3108_s18, 4  ;;  %s1818_s11 = int_to_ptr.vmem [resolvable:$true] %s1817_s11 }
 0xa48   : > { %s3457_s24 = sld [smem:[#allocation29_spill]]  ;;  %s1804_s1 = scalar_lea.sflag [#allocation6], %s3025_s10 }
 0xa49   : > { %s3458_s29 = sld [smem:[#allocation47_spill]]  ;;  %s2570_s30 = scalar_lea.vmem %s1818_s11, 128 }
 0xa4a   : > { %p2571_p13 = scmp.ne.s32.totalorder %s1818_s11, %s2570_s30  ;;  %s2715_s12 = smov [#allocation12]  }
 0xa4b   : > { %s2574_s27 = sshll.u32 %s2715_s12, 4  ;;  %s2575_s27 = int_to_ptr.vmem [resolvable:$false] %s2574_s27 }
 0xa4c   : > { %s2576_s0 = scalar_lea.vmem %s2575_s27, 256  ;;  %p2577_p10 = scmp.lt.s32.totalorder %s1818_s11, %s2575_s27 }
 0xa4d   : > { %s2142_s15 = sshll.u32 %s3456_s3, 7  ;;  %p2578_p8 = scmp.lt.s32.totalorder %s2576_s0, %s2570_s30 }
 0xa4e   : > { %p3459_p5 = scmp.ne.s32.totalorder %s3457_s24, 0 }
 0xa4f   : > { %s1815_s7 = scalar_lea.hbm %s3458_s29, %s2142_s15  ;;  %p2579_p7 = por %p2578_p8, %p2577_p10 }
 0xa50   : > { %p2572_p11 = pnand %p2571_p13, %p3459_p5 }
 0xa52   : > { %p2573_p12 = pneg %p2572_p11 }
 0xa54   : > { %p2580_p2 = pnand %p2579_p7, %p2573_p12 }
 0xa56   : > { %2583 = shalt.err (!%p2580_p2)
}
 0xa57   : > { %s2584_s5 = scalar_lea.hbm %s1815_s7, 128  ;;  %s2588_s19 = scalar_lea.hbm %s3458_s29, 256 }
 0xa58   : > { %p2585_p0 = scmp.ne.s32.totalorder %s1815_s7, %s2584_s5  ;;  %p2589_p9 = scmp.lt.s32.totalorder %s1815_s7, %s3458_s29 }
 0xa59   : > { %p2590_p1 = scmp.lt.s32.totalorder %s2588_s19, %s2584_s5 }
 0xa5a   : > { %p2586_p4 = pnand %p2585_p0, %p3459_p5 }
 0xa5b   : > { %p2591_p3 = por %p2590_p1, %p2589_p9 }
 0xa5c   : > { %p2587_p6 = pneg %p2586_p4 }
 0xa5e   : > { %p2592_p13 = pnand %p2591_p3, %p2587_p6 }
 0xa60   : > { %2595 = shalt.err (!%p2592_p13)
}
 0xa61   : > { %2296 = dma.vmem_to_hbm [thread:$0]  (%p3459_p5), %s1818_s11, 128, %s1815_s7, %s1804_s1  }
 0xa62 PF: > { %s3460_s16 = sld [smem:[#allocation19_spill]]  ;;  %p2316_p11 = scmp.ge.s32.totalorder %s2698_s28, 2 }
 0xa63   : > { %s3461_s6 = sld [smem:[#allocation31_spill]] }
 0xa68   : > { %s1829_s2 = sand.u32 1, %s3460_s16  }
 0xa69   : > { %p3462_p12 = scmp.ne.s32.totalorder %s3461_s6, 0  ;;  %s1830_s8 = scalar_lea.sflag [#allocation6], %s1829_s2 }
 0xa6b   : > { %p2312_p10 = pnand %p2316_p11, %p3462_p12 }
 0xa6d   : > { %p2313_p8 = pneg %p2312_p10 }
 0xa6f   : > { %2653 = dma.done.wait (%p2313_p8), %s1830_s8, 128  }
 0xa70   : > { %2655 = vsyncadd (%p2313_p8), %s1830_s8, 4294967168  ;;  %s37_s28 = sadd.s32 1, %s2698_s28   ;;  %s3463_s18 = sld [smem:[#allocation17_spill]] }
 0xa71   : > { %p34_p7 = scmp.ge.s32.totalorder %s37_s28, 6   ;;  %s3464_s19 = sld [smem:[#allocation18_spill]] }
 0xa72   : > { %s3465_s20 = sld [smem:[#allocation27_spill]] }
 0xa73   : > { %s3466_s21 = sld [smem:[#allocation20_spill]] }
 0xa74   : > { %s3467_s22 = sld [smem:[#allocation21_spill]] }
 0xa75   : > { %s3468_s23 = sld [smem:[#allocation30_spill]]  ;;  %36 = sbr.rel (!%p34_p7) target bundleno = 30 (0x1e), region = 203 }
 0xa76   : > { %s3469_s24 = sld [smem:[#allocation24_spill]] }
 0xa77   : > { %s3470_s25 = sld [smem:[#allocation25_spill]] }
 0xa78   : > { %s3471_s26 = sld [smem:[#allocation26_spill]] }
 0xa79   : > { %s3472_s27 = sld [smem:[#allocation28_spill]] }
 0xa7a   :  { %1835 = vsyncpa [#allocation5], 1 }
 0xa7b   :  { %1837 = vsyncpa [#allocation5 + $0x1], 1 }
 0xa7c   :  { %1838 = vsyncpa [#allocation8], 1 }
 0xa7d   :  { %1840 = vsyncpa [#allocation8 + $0x1], 1 }
 0xa7e   :  { %1841 = vsyncpa [#allocation11], 1 }
 0xa7f   :  { %1843 = vsyncpa [#allocation11 + $0x1], 1 }
 0xa80   :  { %1844 = vsyncpa [#allocation6], 1 }
 0xa81   :  { %1846 = vsyncpa [#allocation6 + $0x1], 1 }

</bundles_post_ra>
